<compile_context>
chip_gen: v6e
topology: v6e:2x2x1
jax: 0.10.0
libtpu: 0.0.40
codegen_flags: <defaults>
</compile_context>

<pallas_src>
import functools

import jax
import jax.numpy as jnp
from jax.experimental import pallas as pl
from jax.experimental.pallas import tpu as pltpu

IN_FTRS = 4
OUT_FTRS = 8
H_IN = W_IN = 16
H = W = H_IN * 2          # spatial size after the 2x nearest upsample
HW = H * W                # 1024 -> sits on the 128-lane axis inside the kernel
KH = KW = 3
TAPS = KH * KW
C_PAD = 8                 # conv-input channels padded to the 8-sublane granule


def _make_kernel(b_tile, mxu_dtype):
    """Kernel processing b_tile images per grid step, MXU operands in mxu_dtype."""

    def kernel(xu_ref,    # (b_tile, C_PAD, HW) f32 upsampled input (chans IN.. zero)
               mask_ref,  # (TAPS, C_PAD, HW)   f32 0/1 border mask per 3x3 tap
               w1_ref,    # (TAPS, OUT, C_PAD)  conv1 per-tap weight, BN scale folded
               b1_ref,    # (OUT, 1)            conv1 bias (folded BN bias), f32
               w2_ref,    # (TAPS, OUT, OUT)    conv2 per-tap weight, BN scale folded
               wid_ref,   # (OUT, C_PAD)        identity-path 1x1 conv weight
               bf_ref,    # (OUT, 1)            merged bias: conv2 BN bias + id bias
               out_ref):  # (b_tile, OUT, HW)   f32

        # Hoisted lane-broadcasts (JAX does not CSE broadcast_in_dim inside loops).
        b1b = jnp.broadcast_to(b1_ref[...], (OUT_FTRS, HW))
        bfb = jnp.broadcast_to(bf_ref[...], (OUT_FTRS, HW))
        wid = wid_ref[...]

        for b in range(b_tile):                       # static unroll over the tile
            xu = xu_ref[b]                            # (C_PAD, HW) f32
            xu_c = xu.astype(mxu_dtype)

            # ---- conv1 (3x3, BN scale folded): 9 tap-accumulating MXU dots ----
            acc1 = b1b
            for t in range(TAPS):
                off = (t // KW - 1) * W + (t % KW - 1)
                if off == 0:
                    tap = xu_c                         # centre tap: no shift, no mask
                else:
                    # roll+mask in f32 (v5e-safe); cast only at the matmul boundary
                    tap = (pltpu.roll(xu, (-off) % HW, 1)     # tap[p] = xu[p + off]
                           * mask_ref[t]).astype(mxu_dtype)
                acc1 = acc1 + jnp.dot(w1_ref[t], tap,
                                      preferred_element_type=jnp.float32)
            y1 = jnp.maximum(acc1, 0.0)                # BN bias folded in b1b; ReLU

            # ---- conv2 (3x3) + fused identity 1x1, one shared accumulator ----
            acc2 = bfb + jnp.dot(wid, xu_c, preferred_element_type=jnp.float32)
            for t in range(TAPS):
                off = (t // KW - 1) * W + (t % KW - 1)
                if off == 0:
                    tap = y1.astype(mxu_dtype)
                else:
                    tap = (pltpu.roll(y1, (-off) % HW, 1)
                           * mask_ref[t]).astype(mxu_dtype)
                acc2 = acc2 + jnp.dot(w2_ref[t], tap,
                                      preferred_element_type=jnp.float32)

            # residual add (already in acc2) + final ReLU; lane-dense store
            out_ref[b] = jnp.maximum(acc2, 0.0)

    return kernel


def _tap_masks():
    """(TAPS, C_PAD, HW) f32 0/1 mask of valid source positions per 3x3 tap,
    pre-broadcast over the channel sublanes so the in-kernel multiply is aligned."""
    ys = jnp.arange(H).reshape(H, 1)
    xs = jnp.arange(W).reshape(1, W)
    rows = []
    for dy in range(KH):
        for dx in range(KW):
            ky, kx = dy - 1, dx - 1
            valid = (ys + ky >= 0) & (ys + ky < H) & (xs + kx >= 0) & (xs + kx < W)
            rows.append(valid.reshape(1, 1, HW))
    m = jnp.concatenate(rows, axis=0).astype(jnp.float32)       # (TAPS, 1, HW)
    return jnp.broadcast_to(m, (TAPS, C_PAD, HW))


@functools.partial(jax.jit, static_argnames=("mxu_dtype",))
def resblock_up(x_nchw, params, *, mxu_dtype=jnp.bfloat16):
    """x_nchw: (N, IN_FTRS, 16, 16) f32 -> (N, OUT_FTRS, 32, 32) f32 (NCHW)."""
    w_up, s_up, b_up, w_ex, s_ex, b_ex, w_id, b_id = params
    n = x_nchw.shape[0]

    # Per-step batch tile: as large as useful, but keep >= 2 grid steps when possible
    # so the "parallel" grid axis can shard across v7x's two TensorCores.
    b_tile = min(8, max(1, n // 2))
    n_pad = pl.cdiv(n, b_tile) * b_tile

    # nearest 2x upsample (shared by both paths), flatten spatial onto the lane axis,
    # zero-pad channels to the 8-sublane granule and batch to a multiple of b_tile.
    x = x_nchw.astype(jnp.float32)
    xu = jnp.repeat(jnp.repeat(x, 2, axis=2), 2, axis=3).reshape(n, IN_FTRS, HW)
    xu = jnp.pad(xu, ((0, n_pad - n), (0, C_PAD - IN_FTRS), (0, 0)))  # (n_pad,C_PAD,HW)

    # fold BN scales into the conv weights; per-tap (TAPS, OUT, C_in) MXU layout.
    w1 = jnp.pad(w_up * s_up.reshape(1, 1, 1, OUT_FTRS),
                 ((0, 0), (0, 0), (0, C_PAD - IN_FTRS), (0, 0)))      # (3,3,C_PAD,OUT)
    w1t = jnp.transpose(w1.reshape(TAPS, C_PAD, OUT_FTRS), (0, 2, 1)).astype(mxu_dtype)
    w2 = (w_ex * s_ex.reshape(1, 1, 1, OUT_FTRS)).reshape(TAPS, OUT_FTRS, OUT_FTRS)
    w2t = jnp.transpose(w2, (0, 2, 1)).astype(mxu_dtype)
    widp = jnp.pad(jnp.transpose(w_id),
                   ((0, 0), (0, C_PAD - IN_FTRS))).astype(mxu_dtype)  # (OUT, C_PAD)
    b1 = b_up.reshape(OUT_FTRS, 1).astype(jnp.float32)
    bf = (b_ex + b_id).reshape(OUT_FTRS, 1).astype(jnp.float32)

    masks = _tap_masks()

    grid = (n_pad // b_tile,)
    wbytes = jnp.dtype(mxu_dtype).itemsize
    flops = 2 * n_pad * HW * (TAPS * C_PAD * OUT_FTRS
                              + TAPS * OUT_FTRS * OUT_FTRS
                              + C_PAD * OUT_FTRS)
    bytes_accessed = (4 * (xu.size + masks.size + b1.size + bf.size
                           + n_pad * OUT_FTRS * HW)
                      + wbytes * (w1t.size + w2t.size + widp.size))

    out = pl.pallas_call(
        _make_kernel(b_tile, mxu_dtype),
        out_shape=jax.ShapeDtypeStruct((n_pad, OUT_FTRS, HW), jnp.float32),
        grid_spec=pltpu.PrefetchScalarGridSpec(
            num_scalar_prefetch=0,
            grid=grid,
            in_specs=[
                pl.BlockSpec((b_tile, C_PAD, HW), lambda i: (i, 0, 0)),
                pl.BlockSpec((TAPS, C_PAD, HW), lambda i: (0, 0, 0)),
                pl.BlockSpec((TAPS, OUT_FTRS, C_PAD), lambda i: (0, 0, 0)),
                pl.BlockSpec((OUT_FTRS, 1), lambda i: (0, 0)),
                pl.BlockSpec((TAPS, OUT_FTRS, OUT_FTRS), lambda i: (0, 0, 0)),
                pl.BlockSpec((OUT_FTRS, C_PAD), lambda i: (0, 0)),
                pl.BlockSpec((OUT_FTRS, 1), lambda i: (0, 0)),
            ],
            out_specs=pl.BlockSpec((b_tile, OUT_FTRS, HW), lambda i: (i, 0, 0)),
        ),
        compiler_params=pltpu.CompilerParams(dimension_semantics=("parallel",)),
        cost_estimate=pl.CostEstimate(flops=flops, transcendentals=0,
                                      bytes_accessed=bytes_accessed),
    )(xu, masks, w1t, b1, w2t, widp, bf)

    # (N, OUT, H*W) is already channels-first: slice off batch padding, free reshape.
    return out[:n].reshape(n, OUT_FTRS, H, W)


def init_params(key):
    """Deterministic synthetic parameters (shapes follow the module's __init__)."""
    ks = jax.random.split(key, 5)
    w_up = 0.1 * jax.random.normal(ks[0], (KH, KW, IN_FTRS, OUT_FTRS), jnp.float32)
    w_ex = 0.1 * jax.random.normal(ks[1], (KH, KW, OUT_FTRS, OUT_FTRS), jnp.float32)
    w_id = 0.1 * jax.random.normal(ks[2], (IN_FTRS, OUT_FTRS), jnp.float32)
    b_id = 0.1 * jax.random.normal(ks[3], (1, OUT_FTRS), jnp.float32)

    # TODO(synk): training-mode BatchNorm (batch statistics over N,H,W) not modelled;
    # we use inference-mode BN folded into per-channel scale/bias.
    eps = 1e-5

    def folded_bn(k):
        kg, kb, km, kv = jax.random.split(k, 4)
        gamma = 1.0 + 0.1 * jax.random.normal(kg, (1, OUT_FTRS), jnp.float32)
        beta = 0.1 * jax.random.normal(kb, (1, OUT_FTRS), jnp.float32)
        mean = 0.1 * jax.random.normal(km, (1, OUT_FTRS), jnp.float32)
        var = jnp.abs(1.0 + 0.1 * jax.random.normal(kv, (1, OUT_FTRS), jnp.float32))
        scale = gamma / jnp.sqrt(var + eps)
        bias = beta - mean * scale
        return scale, bias

    kbn1, kbn2 = jax.random.split(ks[4], 2)
    s_up, b_up = folded_bn(kbn1)
    s_ex, b_ex = folded_bn(kbn2)
    return (w_up, s_up, b_up, w_ex, s_ex, b_ex, w_id, b_id)


def reference(x_nchw, params):
    """Pure-JAX f32 reference of the same forward pass (for validation)."""
    w_up, s_up, b_up, w_ex, s_ex, b_ex, w_id, b_id = params
    x = jnp.transpose(x_nchw, (0, 2, 3, 1)).astype(jnp.float32)
    xu = jnp.repeat(jnp.repeat(x, 2, axis=1), 2, axis=2)
    dn = ('NHWC', 'HWIO', 'NHWC')
    y1 = jax.lax.conv_general_dilated(xu, w_up, (1, 1), 'SAME', dimension_numbers=dn)
    y1 = jnp.maximum(y1 * s_up.reshape(1, 1, 1, -1) + b_up.reshape(1, 1, 1, -1), 0.0)
    y2 = jax.lax.conv_general_dilated(y1, w_ex, (1, 1), 'SAME', dimension_numbers=dn)
    y2 = y2 * s_ex.reshape(1, 1, 1, -1) + b_ex.reshape(1, 1, 1, -1)
    idv = jnp.einsum('nhwc,co->nhwo', xu, w_id) + b_id.reshape(1, 1, 1, -1)
    out = jnp.maximum(y2 + idv, 0.0)
    return jnp.transpose(out, (0, 3, 1, 2))


if __name__ == "__main__":
    key = jax.random.PRNGKey(0)
    kx, kp = jax.random.split(key)
    x = jax.random.normal(kx, (2, IN_FTRS, H_IN, W_IN), jnp.float32)   # NCHW, like PyTorch
    params = init_params(kp)
    ref = reference(x, params)

    # Structural-correctness run: f32 MXU operands, original tight tolerance.
    out_f32 = jax.block_until_ready(resblock_up(x, params, mxu_dtype=jnp.float32))
    assert out_f32.shape == (2, OUT_FTRS, H, W), out_f32.shape
    if not bool(jnp.allclose(out_f32, ref, atol=1e-4, rtol=1e-4)):
        raise AssertionError("f32 Pallas ResBlockUp does not match JAX reference")

    # Throughput configuration (bf16 MXU operands, f32 accumulate -> v6e/v7x setting).
    # Looser tolerance vs. the f32 reference accounts for bf16 operand quantization.
    out_bf16 = jax.block_until_ready(resblock_up(x, params, mxu_dtype=jnp.bfloat16))
    if not bool(jnp.allclose(out_bf16, ref, atol=3e-2, rtol=3e-2)):
        raise AssertionError("bf16 Pallas ResBlockUp deviates beyond bf16 tolerance")

    # Exercise the batched (B_TILE > 1) + batch-padding path as well.
    xb = jax.random.normal(jax.random.PRNGKey(1), (13, IN_FTRS, H_IN, W_IN), jnp.float32)
    out_b = jax.block_until_ready(resblock_up(xb, params))            # b_tile=6, grid=3
    if not bool(jnp.allclose(out_b, reference(xb, params), atol=3e-2, rtol=3e-2)):
        raise AssertionError("batched Pallas ResBlockUp deviates from JAX reference")

    print("KERNEL_OK")
</pallas_src>

<mosaic_0001>
module attributes {stable_mosaic.version = 11 : i64} {
  func.func @kernel(%arg0: i32, %arg1: memref<1x8x1024xf32, #tpu.memory_space<vmem>>, %arg2: memref<9x8x1024xf32, #tpu.memory_space<vmem>>, %arg3: memref<9x8x8xf32, #tpu.memory_space<vmem>>, %arg4: memref<8x1xf32, #tpu.memory_space<vmem>>, %arg5: memref<9x8x8xf32, #tpu.memory_space<vmem>>, %arg6: memref<8x8xf32, #tpu.memory_space<vmem>>, %arg7: memref<8x1xf32, #tpu.memory_space<vmem>>, %arg8: memref<1x8x1024xf32, #tpu.memory_space<vmem>>) attributes {dimension_semantics = [#tpu.dimension_semantics<parallel>], iteration_bounds = array<i64: 2>, scalar_prefetch = 0 : i64, scratch_operands = 0 : i64, tpu.core_type = #tpu.core_type<tc>, window_params = [{transform_indices = @transform_0, window_bounds = array<i64: 1, 8, 1024>}, {pipeline_mode = #tpu.pipeline_mode<synchronous>, transform_indices = @transform_1, window_bounds = array<i64: 9, 8, 1024>}, {pipeline_mode = #tpu.pipeline_mode<synchronous>, transform_indices = @transform_2, window_bounds = array<i64: 9, 8, 8>}, {pipeline_mode = #tpu.pipeline_mode<synchronous>, transform_indices = @transform_3, window_bounds = array<i64: 8, 1>}, {pipeline_mode = #tpu.pipeline_mode<synchronous>, transform_indices = @transform_4, window_bounds = array<i64: 9, 8, 8>}, {pipeline_mode = #tpu.pipeline_mode<synchronous>, transform_indices = @transform_5, window_bounds = array<i64: 8, 8>}, {pipeline_mode = #tpu.pipeline_mode<synchronous>, transform_indices = @transform_6, window_bounds = array<i64: 8, 1>}, {transform_indices = @transform_7, window_bounds = array<i64: 1, 8, 1024>}]} {
    %c0 = arith.constant 0 : index
    %c0_0 = arith.constant 0 : index
    %0 = vector.load %arg4[%c0, %c0_0] : memref<8x1xf32, #tpu.memory_space<vmem>>, vector<8x1xf32>
    %1 = vector.shape_cast %0 : vector<8x1xf32> to vector<8x1xf32>
    %2 = vector.broadcast %1 : vector<8x1xf32> to vector<8x1024xf32>
    %c0_1 = arith.constant 0 : index
    %c0_2 = arith.constant 0 : index
    %3 = vector.load %arg7[%c0_1, %c0_2] : memref<8x1xf32, #tpu.memory_space<vmem>>, vector<8x1xf32>
    %4 = vector.shape_cast %3 : vector<8x1xf32> to vector<8x1xf32>
    %5 = vector.broadcast %4 : vector<8x1xf32> to vector<8x1024xf32>
    %c0_3 = arith.constant 0 : index
    %c0_4 = arith.constant 0 : index
    %6 = vector.load %arg6[%c0_3, %c0_4] : memref<8x8xf32, #tpu.memory_space<vmem>>, vector<8x8xf32>
    %c0_5 = arith.constant 0 : index
    %c0_6 = arith.constant 0 : index
    %c0_7 = arith.constant 0 : index
    %7 = vector.load %arg1[%c0_5, %c0_6, %c0_7] : memref<1x8x1024xf32, #tpu.memory_space<vmem>>, vector<1x8x1024xf32>
    %8 = vector.shape_cast %7 : vector<1x8x1024xf32> to vector<8x1024xf32>
    %c33_i32 = arith.constant 33 : i32
    %9 = tpu.dynamic_rotate %8 by %c33_i32 dim 1 : vector<8x1024xf32>, i32 -> vector<8x1024xf32>
    %c0_8 = arith.constant 0 : index
    %c0_9 = arith.constant 0 : index
    %c0_10 = arith.constant 0 : index
    %10 = vector.load %arg2[%c0_8, %c0_9, %c0_10] : memref<9x8x1024xf32, #tpu.memory_space<vmem>>, vector<1x8x1024xf32>
    %11 = vector.shape_cast %10 : vector<1x8x1024xf32> to vector<8x1024xf32>
    %12 = arith.mulf %9, %11 : vector<8x1024xf32>
    %c0_11 = arith.constant 0 : index
    %c0_12 = arith.constant 0 : index
    %c0_13 = arith.constant 0 : index
    %13 = vector.load %arg3[%c0_11, %c0_12, %c0_13] : memref<9x8x8xf32, #tpu.memory_space<vmem>>, vector<1x8x8xf32>
    %14 = vector.shape_cast %13 : vector<1x8x8xf32> to vector<8x8xf32>
    %cst = arith.constant dense<0.000000e+00> : vector<8x1024xf32>
    %15 = tpu.matmul %14, %12, %cst {dimension_numbers = #tpu.dot_dimension_numbers<[1], [0], [0], [1], [0, 0, 1, 1], [], []>} : vector<8x8xf32>, vector<8x1024xf32>, vector<8x1024xf32> -> vector<8x1024xf32>
    %16 = arith.addf %2, %15 : vector<8x1024xf32>
    %c32_i32 = arith.constant 32 : i32
    %17 = tpu.dynamic_rotate %8 by %c32_i32 dim 1 : vector<8x1024xf32>, i32 -> vector<8x1024xf32>
    %c1 = arith.constant 1 : index
    %c0_14 = arith.constant 0 : index
    %c0_15 = arith.constant 0 : index
    %18 = vector.load %arg2[%c1, %c0_14, %c0_15] : memref<9x8x1024xf32, #tpu.memory_space<vmem>>, vector<1x8x1024xf32>
    %19 = vector.shape_cast %18 : vector<1x8x1024xf32> to vector<8x1024xf32>
    %20 = arith.mulf %17, %19 : vector<8x1024xf32>
    %c1_16 = arith.constant 1 : index
    %c0_17 = arith.constant 0 : index
    %c0_18 = arith.constant 0 : index
    %21 = vector.load %arg3[%c1_16, %c0_17, %c0_18] : memref<9x8x8xf32, #tpu.memory_space<vmem>>, vector<1x8x8xf32>
    %22 = vector.shape_cast %21 : vector<1x8x8xf32> to vector<8x8xf32>
    %cst_19 = arith.constant dense<0.000000e+00> : vector<8x1024xf32>
    %23 = tpu.matmul %22, %20, %cst_19 {dimension_numbers = #tpu.dot_dimension_numbers<[1], [0], [0], [1], [0, 0, 1, 1], [], []>} : vector<8x8xf32>, vector<8x1024xf32>, vector<8x1024xf32> -> vector<8x1024xf32>
    %24 = arith.addf %16, %23 : vector<8x1024xf32>
    %c31_i32 = arith.constant 31 : i32
    %25 = tpu.dynamic_rotate %8 by %c31_i32 dim 1 : vector<8x1024xf32>, i32 -> vector<8x1024xf32>
    %c2 = arith.constant 2 : index
    %c0_20 = arith.constant 0 : index
    %c0_21 = arith.constant 0 : index
    %26 = vector.load %arg2[%c2, %c0_20, %c0_21] : memref<9x8x1024xf32, #tpu.memory_space<vmem>>, vector<1x8x1024xf32>
    %27 = vector.shape_cast %26 : vector<1x8x1024xf32> to vector<8x1024xf32>
    %28 = arith.mulf %25, %27 : vector<8x1024xf32>
    %c2_22 = arith.constant 2 : index
    %c0_23 = arith.constant 0 : index
    %c0_24 = arith.constant 0 : index
    %29 = vector.load %arg3[%c2_22, %c0_23, %c0_24] : memref<9x8x8xf32, #tpu.memory_space<vmem>>, vector<1x8x8xf32>
    %30 = vector.shape_cast %29 : vector<1x8x8xf32> to vector<8x8xf32>
    %cst_25 = arith.constant dense<0.000000e+00> : vector<8x1024xf32>
    %31 = tpu.matmul %30, %28, %cst_25 {dimension_numbers = #tpu.dot_dimension_numbers<[1], [0], [0], [1], [0, 0, 1, 1], [], []>} : vector<8x8xf32>, vector<8x1024xf32>, vector<8x1024xf32> -> vector<8x1024xf32>
    %32 = arith.addf %24, %31 : vector<8x1024xf32>
    %c1_i32 = arith.constant 1 : i32
    %33 = tpu.dynamic_rotate %8 by %c1_i32 dim 1 : vector<8x1024xf32>, i32 -> vector<8x1024xf32>
    %c3 = arith.constant 3 : index
    %c0_26 = arith.constant 0 : index
    %c0_27 = arith.constant 0 : index
    %34 = vector.load %arg2[%c3, %c0_26, %c0_27] : memref<9x8x1024xf32, #tpu.memory_space<vmem>>, vector<1x8x1024xf32>
    %35 = vector.shape_cast %34 : vector<1x8x1024xf32> to vector<8x1024xf32>
    %36 = arith.mulf %33, %35 : vector<8x1024xf32>
    %c3_28 = arith.constant 3 : index
    %c0_29 = arith.constant 0 : index
    %c0_30 = arith.constant 0 : index
    %37 = vector.load %arg3[%c3_28, %c0_29, %c0_30] : memref<9x8x8xf32, #tpu.memory_space<vmem>>, vector<1x8x8xf32>
    %38 = vector.shape_cast %37 : vector<1x8x8xf32> to vector<8x8xf32>
    %cst_31 = arith.constant dense<0.000000e+00> : vector<8x1024xf32>
    %39 = tpu.matmul %38, %36, %cst_31 {dimension_numbers = #tpu.dot_dimension_numbers<[1], [0], [0], [1], [0, 0, 1, 1], [], []>} : vector<8x8xf32>, vector<8x1024xf32>, vector<8x1024xf32> -> vector<8x1024xf32>
    %40 = arith.addf %32, %39 : vector<8x1024xf32>
    %c4 = arith.constant 4 : index
    %c0_32 = arith.constant 0 : index
    %c0_33 = arith.constant 0 : index
    %41 = vector.load %arg3[%c4, %c0_32, %c0_33] : memref<9x8x8xf32, #tpu.memory_space<vmem>>, vector<1x8x8xf32>
    %42 = vector.shape_cast %41 : vector<1x8x8xf32> to vector<8x8xf32>
    %cst_34 = arith.constant dense<0.000000e+00> : vector<8x1024xf32>
    %43 = tpu.matmul %42, %8, %cst_34 {dimension_numbers = #tpu.dot_dimension_numbers<[1], [0], [0], [1], [0, 0, 1, 1], [], []>} : vector<8x8xf32>, vector<8x1024xf32>, vector<8x1024xf32> -> vector<8x1024xf32>
    %44 = arith.addf %40, %43 : vector<8x1024xf32>
    %c1023_i32 = arith.constant 1023 : i32
    %45 = tpu.dynamic_rotate %8 by %c1023_i32 dim 1 : vector<8x1024xf32>, i32 -> vector<8x1024xf32>
    %c5 = arith.constant 5 : index
    %c0_35 = arith.constant 0 : index
    %c0_36 = arith.constant 0 : index
    %46 = vector.load %arg2[%c5, %c0_35, %c0_36] : memref<9x8x1024xf32, #tpu.memory_space<vmem>>, vector<1x8x1024xf32>
    %47 = vector.shape_cast %46 : vector<1x8x1024xf32> to vector<8x1024xf32>
    %48 = arith.mulf %45, %47 : vector<8x1024xf32>
    %c5_37 = arith.constant 5 : index
    %c0_38 = arith.constant 0 : index
    %c0_39 = arith.constant 0 : index
    %49 = vector.load %arg3[%c5_37, %c0_38, %c0_39] : memref<9x8x8xf32, #tpu.memory_space<vmem>>, vector<1x8x8xf32>
    %50 = vector.shape_cast %49 : vector<1x8x8xf32> to vector<8x8xf32>
    %cst_40 = arith.constant dense<0.000000e+00> : vector<8x1024xf32>
    %51 = tpu.matmul %50, %48, %cst_40 {dimension_numbers = #tpu.dot_dimension_numbers<[1], [0], [0], [1], [0, 0, 1, 1], [], []>} : vector<8x8xf32>, vector<8x1024xf32>, vector<8x1024xf32> -> vector<8x1024xf32>
    %52 = arith.addf %44, %51 : vector<8x1024xf32>
    %c993_i32 = arith.constant 993 : i32
    %53 = tpu.dynamic_rotate %8 by %c993_i32 dim 1 : vector<8x1024xf32>, i32 -> vector<8x1024xf32>
    %c6 = arith.constant 6 : index
    %c0_41 = arith.constant 0 : index
    %c0_42 = arith.constant 0 : index
    %54 = vector.load %arg2[%c6, %c0_41, %c0_42] : memref<9x8x1024xf32, #tpu.memory_space<vmem>>, vector<1x8x1024xf32>
    %55 = vector.shape_cast %54 : vector<1x8x1024xf32> to vector<8x1024xf32>
    %56 = arith.mulf %53, %55 : vector<8x1024xf32>
    %c6_43 = arith.constant 6 : index
    %c0_44 = arith.constant 0 : index
    %c0_45 = arith.constant 0 : index
    %57 = vector.load %arg3[%c6_43, %c0_44, %c0_45] : memref<9x8x8xf32, #tpu.memory_space<vmem>>, vector<1x8x8xf32>
    %58 = vector.shape_cast %57 : vector<1x8x8xf32> to vector<8x8xf32>
    %cst_46 = arith.constant dense<0.000000e+00> : vector<8x1024xf32>
    %59 = tpu.matmul %58, %56, %cst_46 {dimension_numbers = #tpu.dot_dimension_numbers<[1], [0], [0], [1], [0, 0, 1, 1], [], []>} : vector<8x8xf32>, vector<8x1024xf32>, vector<8x1024xf32> -> vector<8x1024xf32>
    %60 = arith.addf %52, %59 : vector<8x1024xf32>
    %c992_i32 = arith.constant 992 : i32
    %61 = tpu.dynamic_rotate %8 by %c992_i32 dim 1 : vector<8x1024xf32>, i32 -> vector<8x1024xf32>
    %c7 = arith.constant 7 : index
    %c0_47 = arith.constant 0 : index
    %c0_48 = arith.constant 0 : index
    %62 = vector.load %arg2[%c7, %c0_47, %c0_48] : memref<9x8x1024xf32, #tpu.memory_space<vmem>>, vector<1x8x1024xf32>
    %63 = vector.shape_cast %62 : vector<1x8x1024xf32> to vector<8x1024xf32>
    %64 = arith.mulf %61, %63 : vector<8x1024xf32>
    %c7_49 = arith.constant 7 : index
    %c0_50 = arith.constant 0 : index
    %c0_51 = arith.constant 0 : index
    %65 = vector.load %arg3[%c7_49, %c0_50, %c0_51] : memref<9x8x8xf32, #tpu.memory_space<vmem>>, vector<1x8x8xf32>
    %66 = vector.shape_cast %65 : vector<1x8x8xf32> to vector<8x8xf32>
    %cst_52 = arith.constant dense<0.000000e+00> : vector<8x1024xf32>
    %67 = tpu.matmul %66, %64, %cst_52 {dimension_numbers = #tpu.dot_dimension_numbers<[1], [0], [0], [1], [0, 0, 1, 1], [], []>} : vector<8x8xf32>, vector<8x1024xf32>, vector<8x1024xf32> -> vector<8x1024xf32>
    %68 = arith.addf %60, %67 : vector<8x1024xf32>
    %c991_i32 = arith.constant 991 : i32
    %69 = tpu.dynamic_rotate %8 by %c991_i32 dim 1 : vector<8x1024xf32>, i32 -> vector<8x1024xf32>
    %c8 = arith.constant 8 : index
    %c0_53 = arith.constant 0 : index
    %c0_54 = arith.constant 0 : index
    %70 = vector.load %arg2[%c8, %c0_53, %c0_54] : memref<9x8x1024xf32, #tpu.memory_space<vmem>>, vector<1x8x1024xf32>
    %71 = vector.shape_cast %70 : vector<1x8x1024xf32> to vector<8x1024xf32>
    %72 = arith.mulf %69, %71 : vector<8x1024xf32>
    %c8_55 = arith.constant 8 : index
    %c0_56 = arith.constant 0 : index
    %c0_57 = arith.constant 0 : index
    %73 = vector.load %arg3[%c8_55, %c0_56, %c0_57] : memref<9x8x8xf32, #tpu.memory_space<vmem>>, vector<1x8x8xf32>
    %74 = vector.shape_cast %73 : vector<1x8x8xf32> to vector<8x8xf32>
    %cst_58 = arith.constant dense<0.000000e+00> : vector<8x1024xf32>
    %75 = tpu.matmul %74, %72, %cst_58 {dimension_numbers = #tpu.dot_dimension_numbers<[1], [0], [0], [1], [0, 0, 1, 1], [], []>} : vector<8x8xf32>, vector<8x1024xf32>, vector<8x1024xf32> -> vector<8x1024xf32>
    %76 = arith.addf %68, %75 : vector<8x1024xf32>
    %cst_59 = arith.constant 0.000000e+00 : f32
    %77 = vector.broadcast %cst_59 : f32 to vector<8x1024xf32>
    %78 = arith.maximumf %76, %77 : vector<8x1024xf32>
    %cst_60 = arith.constant dense<0.000000e+00> : vector<8x1024xf32>
    %79 = tpu.matmul %6, %8, %cst_60 {dimension_numbers = #tpu.dot_dimension_numbers<[1], [0], [0], [1], [0, 0, 1, 1], [], []>} : vector<8x8xf32>, vector<8x1024xf32>, vector<8x1024xf32> -> vector<8x1024xf32>
    %80 = arith.addf %5, %79 : vector<8x1024xf32>
    %c33_i32_61 = arith.constant 33 : i32
    %81 = tpu.dynamic_rotate %78 by %c33_i32_61 dim 1 : vector<8x1024xf32>, i32 -> vector<8x1024xf32>
    %c0_62 = arith.constant 0 : index
    %c0_63 = arith.constant 0 : index
    %c0_64 = arith.constant 0 : index
    %82 = vector.load %arg2[%c0_62, %c0_63, %c0_64] : memref<9x8x1024xf32, #tpu.memory_space<vmem>>, vector<1x8x1024xf32>
    %83 = vector.shape_cast %82 : vector<1x8x1024xf32> to vector<8x1024xf32>
    %84 = arith.mulf %81, %83 : vector<8x1024xf32>
    %c0_65 = arith.constant 0 : index
    %c0_66 = arith.constant 0 : index
    %c0_67 = arith.constant 0 : index
    %85 = vector.load %arg5[%c0_65, %c0_66, %c0_67] : memref<9x8x8xf32, #tpu.memory_space<vmem>>, vector<1x8x8xf32>
    %86 = vector.shape_cast %85 : vector<1x8x8xf32> to vector<8x8xf32>
    %cst_68 = arith.constant dense<0.000000e+00> : vector<8x1024xf32>
    %87 = tpu.matmul %86, %84, %cst_68 {dimension_numbers = #tpu.dot_dimension_numbers<[1], [0], [0], [1], [0, 0, 1, 1], [], []>} : vector<8x8xf32>, vector<8x1024xf32>, vector<8x1024xf32> -> vector<8x1024xf32>
    %88 = arith.addf %80, %87 : vector<8x1024xf32>
    %c32_i32_69 = arith.constant 32 : i32
    %89 = tpu.dynamic_rotate %78 by %c32_i32_69 dim 1 : vector<8x1024xf32>, i32 -> vector<8x1024xf32>
    %c1_70 = arith.constant 1 : index
    %c0_71 = arith.constant 0 : index
    %c0_72 = arith.constant 0 : index
    %90 = vector.load %arg2[%c1_70, %c0_71, %c0_72] : memref<9x8x1024xf32, #tpu.memory_space<vmem>>, vector<1x8x1024xf32>
    %91 = vector.shape_cast %90 : vector<1x8x1024xf32> to vector<8x1024xf32>
    %92 = arith.mulf %89, %91 : vector<8x1024xf32>
    %c1_73 = arith.constant 1 : index
    %c0_74 = arith.constant 0 : index
    %c0_75 = arith.constant 0 : index
    %93 = vector.load %arg5[%c1_73, %c0_74, %c0_75] : memref<9x8x8xf32, #tpu.memory_space<vmem>>, vector<1x8x8xf32>
    %94 = vector.shape_cast %93 : vector<1x8x8xf32> to vector<8x8xf32>
    %cst_76 = arith.constant dense<0.000000e+00> : vector<8x1024xf32>
    %95 = tpu.matmul %94, %92, %cst_76 {dimension_numbers = #tpu.dot_dimension_numbers<[1], [0], [0], [1], [0, 0, 1, 1], [], []>} : vector<8x8xf32>, vector<8x1024xf32>, vector<8x1024xf32> -> vector<8x1024xf32>
    %96 = arith.addf %88, %95 : vector<8x1024xf32>
    %c31_i32_77 = arith.constant 31 : i32
    %97 = tpu.dynamic_rotate %78 by %c31_i32_77 dim 1 : vector<8x1024xf32>, i32 -> vector<8x1024xf32>
    %c2_78 = arith.constant 2 : index
    %c0_79 = arith.constant 0 : index
    %c0_80 = arith.constant 0 : index
    %98 = vector.load %arg2[%c2_78, %c0_79, %c0_80] : memref<9x8x1024xf32, #tpu.memory_space<vmem>>, vector<1x8x1024xf32>
    %99 = vector.shape_cast %98 : vector<1x8x1024xf32> to vector<8x1024xf32>
    %100 = arith.mulf %97, %99 : vector<8x1024xf32>
    %c2_81 = arith.constant 2 : index
    %c0_82 = arith.constant 0 : index
    %c0_83 = arith.constant 0 : index
    %101 = vector.load %arg5[%c2_81, %c0_82, %c0_83] : memref<9x8x8xf32, #tpu.memory_space<vmem>>, vector<1x8x8xf32>
    %102 = vector.shape_cast %101 : vector<1x8x8xf32> to vector<8x8xf32>
    %cst_84 = arith.constant dense<0.000000e+00> : vector<8x1024xf32>
    %103 = tpu.matmul %102, %100, %cst_84 {dimension_numbers = #tpu.dot_dimension_numbers<[1], [0], [0], [1], [0, 0, 1, 1], [], []>} : vector<8x8xf32>, vector<8x1024xf32>, vector<8x1024xf32> -> vector<8x1024xf32>
    %104 = arith.addf %96, %103 : vector<8x1024xf32>
    %c1_i32_85 = arith.constant 1 : i32
    %105 = tpu.dynamic_rotate %78 by %c1_i32_85 dim 1 : vector<8x1024xf32>, i32 -> vector<8x1024xf32>
    %c3_86 = arith.constant 3 : index
    %c0_87 = arith.constant 0 : index
    %c0_88 = arith.constant 0 : index
    %106 = vector.load %arg2[%c3_86, %c0_87, %c0_88] : memref<9x8x1024xf32, #tpu.memory_space<vmem>>, vector<1x8x1024xf32>
    %107 = vector.shape_cast %106 : vector<1x8x1024xf32> to vector<8x1024xf32>
    %108 = arith.mulf %105, %107 : vector<8x1024xf32>
    %c3_89 = arith.constant 3 : index
    %c0_90 = arith.constant 0 : index
    %c0_91 = arith.constant 0 : index
    %109 = vector.load %arg5[%c3_89, %c0_90, %c0_91] : memref<9x8x8xf32, #tpu.memory_space<vmem>>, vector<1x8x8xf32>
    %110 = vector.shape_cast %109 : vector<1x8x8xf32> to vector<8x8xf32>
    %cst_92 = arith.constant dense<0.000000e+00> : vector<8x1024xf32>
    %111 = tpu.matmul %110, %108, %cst_92 {dimension_numbers = #tpu.dot_dimension_numbers<[1], [0], [0], [1], [0, 0, 1, 1], [], []>} : vector<8x8xf32>, vector<8x1024xf32>, vector<8x1024xf32> -> vector<8x1024xf32>
    %112 = arith.addf %104, %111 : vector<8x1024xf32>
    %c4_93 = arith.constant 4 : index
    %c0_94 = arith.constant 0 : index
    %c0_95 = arith.constant 0 : index
    %113 = vector.load %arg5[%c4_93, %c0_94, %c0_95] : memref<9x8x8xf32, #tpu.memory_space<vmem>>, vector<1x8x8xf32>
    %114 = vector.shape_cast %113 : vector<1x8x8xf32> to vector<8x8xf32>
    %cst_96 = arith.constant dense<0.000000e+00> : vector<8x1024xf32>
    %115 = tpu.matmul %114, %78, %cst_96 {dimension_numbers = #tpu.dot_dimension_numbers<[1], [0], [0], [1], [0, 0, 1, 1], [], []>} : vector<8x8xf32>, vector<8x1024xf32>, vector<8x1024xf32> -> vector<8x1024xf32>
    %116 = arith.addf %112, %115 : vector<8x1024xf32>
    %c1023_i32_97 = arith.constant 1023 : i32
    %117 = tpu.dynamic_rotate %78 by %c1023_i32_97 dim 1 : vector<8x1024xf32>, i32 -> vector<8x1024xf32>
    %c5_98 = arith.constant 5 : index
    %c0_99 = arith.constant 0 : index
    %c0_100 = arith.constant 0 : index
    %118 = vector.load %arg2[%c5_98, %c0_99, %c0_100] : memref<9x8x1024xf32, #tpu.memory_space<vmem>>, vector<1x8x1024xf32>
    %119 = vector.shape_cast %118 : vector<1x8x1024xf32> to vector<8x1024xf32>
    %120 = arith.mulf %117, %119 : vector<8x1024xf32>
    %c5_101 = arith.constant 5 : index
    %c0_102 = arith.constant 0 : index
    %c0_103 = arith.constant 0 : index
    %121 = vector.load %arg5[%c5_101, %c0_102, %c0_103] : memref<9x8x8xf32, #tpu.memory_space<vmem>>, vector<1x8x8xf32>
    %122 = vector.shape_cast %121 : vector<1x8x8xf32> to vector<8x8xf32>
    %cst_104 = arith.constant dense<0.000000e+00> : vector<8x1024xf32>
    %123 = tpu.matmul %122, %120, %cst_104 {dimension_numbers = #tpu.dot_dimension_numbers<[1], [0], [0], [1], [0, 0, 1, 1], [], []>} : vector<8x8xf32>, vector<8x1024xf32>, vector<8x1024xf32> -> vector<8x1024xf32>
    %124 = arith.addf %116, %123 : vector<8x1024xf32>
    %c993_i32_105 = arith.constant 993 : i32
    %125 = tpu.dynamic_rotate %78 by %c993_i32_105 dim 1 : vector<8x1024xf32>, i32 -> vector<8x1024xf32>
    %c6_106 = arith.constant 6 : index
    %c0_107 = arith.constant 0 : index
    %c0_108 = arith.constant 0 : index
    %126 = vector.load %arg2[%c6_106, %c0_107, %c0_108] : memref<9x8x1024xf32, #tpu.memory_space<vmem>>, vector<1x8x1024xf32>
    %127 = vector.shape_cast %126 : vector<1x8x1024xf32> to vector<8x1024xf32>
    %128 = arith.mulf %125, %127 : vector<8x1024xf32>
    %c6_109 = arith.constant 6 : index
    %c0_110 = arith.constant 0 : index
    %c0_111 = arith.constant 0 : index
    %129 = vector.load %arg5[%c6_109, %c0_110, %c0_111] : memref<9x8x8xf32, #tpu.memory_space<vmem>>, vector<1x8x8xf32>
    %130 = vector.shape_cast %129 : vector<1x8x8xf32> to vector<8x8xf32>
    %cst_112 = arith.constant dense<0.000000e+00> : vector<8x1024xf32>
    %131 = tpu.matmul %130, %128, %cst_112 {dimension_numbers = #tpu.dot_dimension_numbers<[1], [0], [0], [1], [0, 0, 1, 1], [], []>} : vector<8x8xf32>, vector<8x1024xf32>, vector<8x1024xf32> -> vector<8x1024xf32>
    %132 = arith.addf %124, %131 : vector<8x1024xf32>
    %c992_i32_113 = arith.constant 992 : i32
    %133 = tpu.dynamic_rotate %78 by %c992_i32_113 dim 1 : vector<8x1024xf32>, i32 -> vector<8x1024xf32>
    %c7_114 = arith.constant 7 : index
    %c0_115 = arith.constant 0 : index
    %c0_116 = arith.constant 0 : index
    %134 = vector.load %arg2[%c7_114, %c0_115, %c0_116] : memref<9x8x1024xf32, #tpu.memory_space<vmem>>, vector<1x8x1024xf32>
    %135 = vector.shape_cast %134 : vector<1x8x1024xf32> to vector<8x1024xf32>
    %136 = arith.mulf %133, %135 : vector<8x1024xf32>
    %c7_117 = arith.constant 7 : index
    %c0_118 = arith.constant 0 : index
    %c0_119 = arith.constant 0 : index
    %137 = vector.load %arg5[%c7_117, %c0_118, %c0_119] : memref<9x8x8xf32, #tpu.memory_space<vmem>>, vector<1x8x8xf32>
    %138 = vector.shape_cast %137 : vector<1x8x8xf32> to vector<8x8xf32>
    %cst_120 = arith.constant dense<0.000000e+00> : vector<8x1024xf32>
    %139 = tpu.matmul %138, %136, %cst_120 {dimension_numbers = #tpu.dot_dimension_numbers<[1], [0], [0], [1], [0, 0, 1, 1], [], []>} : vector<8x8xf32>, vector<8x1024xf32>, vector<8x1024xf32> -> vector<8x1024xf32>
    %140 = arith.addf %132, %139 : vector<8x1024xf32>
    %c991_i32_121 = arith.constant 991 : i32
    %141 = tpu.dynamic_rotate %78 by %c991_i32_121 dim 1 : vector<8x1024xf32>, i32 -> vector<8x1024xf32>
    %c8_122 = arith.constant 8 : index
    %c0_123 = arith.constant 0 : index
    %c0_124 = arith.constant 0 : index
    %142 = vector.load %arg2[%c8_122, %c0_123, %c0_124] : memref<9x8x1024xf32, #tpu.memory_space<vmem>>, vector<1x8x1024xf32>
    %143 = vector.shape_cast %142 : vector<1x8x1024xf32> to vector<8x1024xf32>
    %144 = arith.mulf %141, %143 : vector<8x1024xf32>
    %c8_125 = arith.constant 8 : index
    %c0_126 = arith.constant 0 : index
    %c0_127 = arith.constant 0 : index
    %145 = vector.load %arg5[%c8_125, %c0_126, %c0_127] : memref<9x8x8xf32, #tpu.memory_space<vmem>>, vector<1x8x8xf32>
    %146 = vector.shape_cast %145 : vector<1x8x8xf32> to vector<8x8xf32>
    %cst_128 = arith.constant dense<0.000000e+00> : vector<8x1024xf32>
    %147 = tpu.matmul %146, %144, %cst_128 {dimension_numbers = #tpu.dot_dimension_numbers<[1], [0], [0], [1], [0, 0, 1, 1], [], []>} : vector<8x8xf32>, vector<8x1024xf32>, vector<8x1024xf32> -> vector<8x1024xf32>
    %148 = arith.addf %140, %147 : vector<8x1024xf32>
    %cst_129 = arith.constant 0.000000e+00 : f32
    %149 = vector.broadcast %cst_129 : f32 to vector<8x1024xf32>
    %150 = arith.maximumf %148, %149 : vector<8x1024xf32>
    %c0_130 = arith.constant 0 : index
    %c0_131 = arith.constant 0 : index
    %c0_132 = arith.constant 0 : index
    %151 = vector.load %arg8[%c0_130, %c0_131, %c0_132] : memref<1x8x1024xf32, #tpu.memory_space<vmem>>, vector<1x8x1024xf32>
    %152 = vector.shape_cast %151 : vector<1x8x1024xf32> to vector<8x1024xf32>
    %153 = vector.shape_cast %150 : vector<8x1024xf32> to vector<1x8x1024xf32>
    tpu.vector_store %arg8[%c0_130, %c0_131, %c0_132], %153 {strides = array<i32>} : memref<1x8x1024xf32, #tpu.memory_space<vmem>>, vector<1x8x1024xf32>,
    return
  }
  func.func @transform_0(%arg0: i32) -> (i32, i32, i32) {
    %c0_i32 = arith.constant 0 : i32
    %c0_i32_0 = arith.constant 0 : i32
    %c0_i32_1 = arith.constant 0 : i32
    return %arg0, %c0_i32, %c0_i32_0 : i32, i32, i32
  }
  func.func @transform_1(%arg0: i32) -> (i32, i32, i32) {
    %c0_i32 = arith.constant 0 : i32
    %c0_i32_0 = arith.constant 0 : i32
    %c0_i32_1 = arith.constant 0 : i32
    %c0_i32_2 = arith.constant 0 : i32
    return %c0_i32, %c0_i32_0, %c0_i32_1 : i32, i32, i32
  }
  func.func @transform_2(%arg0: i32) -> (i32, i32, i32) {
    %c0_i32 = arith.constant 0 : i32
    %c0_i32_0 = arith.constant 0 : i32
    %c0_i32_1 = arith.constant 0 : i32
    %c0_i32_2 = arith.constant 0 : i32
    return %c0_i32, %c0_i32_0, %c0_i32_1 : i32, i32, i32
  }
  func.func @transform_3(%arg0: i32) -> (i32, i32) {
    %c0_i32 = arith.constant 0 : i32
    %c0_i32_0 = arith.constant 0 : i32
    %c0_i32_1 = arith.constant 0 : i32
    return %c0_i32, %c0_i32_0 : i32, i32
  }
  func.func @transform_4(%arg0: i32) -> (i32, i32, i32) {
    %c0_i32 = arith.constant 0 : i32
    %c0_i32_0 = arith.constant 0 : i32
    %c0_i32_1 = arith.constant 0 : i32
    %c0_i32_2 = arith.constant 0 : i32
    return %c0_i32, %c0_i32_0, %c0_i32_1 : i32, i32, i32
  }
  func.func @transform_5(%arg0: i32) -> (i32, i32) {
    %c0_i32 = arith.constant 0 : i32
    %c0_i32_0 = arith.constant 0 : i32
    %c0_i32_1 = arith.constant 0 : i32
    return %c0_i32, %c0_i32_0 : i32, i32
  }
  func.func @transform_6(%arg0: i32) -> (i32, i32) {
    %c0_i32 = arith.constant 0 : i32
    %c0_i32_0 = arith.constant 0 : i32
    %c0_i32_1 = arith.constant 0 : i32
    return %c0_i32, %c0_i32_0 : i32, i32
  }
  func.func @transform_7(%arg0: i32) -> (i32, i32, i32) {
    %c0_i32 = arith.constant 0 : i32
    %c0_i32_0 = arith.constant 0 : i32
    %c0_i32_1 = arith.constant 0 : i32
    return %arg0, %c0_i32, %c0_i32_0 : i32, i32, i32
  }
}

</mosaic_0001>

<bundles_post_ra>
// kernel: resblock_up.1
= control target key start
LH: loop header
LB: loop body
LE: loop exit
PB: predicated region body
PF: predicated region fallthrough
CT: control target
= control target key end

     0   :  { %s6916_s24 = smov 0   ;;  %s8482_s0 = inlined_call_operand.vmem [shape: f32[2,8,1024], index: 0, kind: input, shape index: {}]   ;;  %s8483_s1 = inlined_call_operand.vmem [shape: f32[9,8,1024], index: 1, kind: input, shape index: {}]   ;;  %s8484_s2 = inlined_call_operand.vmem [shape: f32[9,8,8], index: 2, kind: input, shape index: {}]   ;;  %s8485_s3 = inlined_call_operand.vmem [shape: f32[8,1], index: 3, kind: input, shape index: {}]   ;;  %s8486_s4 = inlined_call_operand.vmem [shape: f32[9,8,8], index: 4, kind: input, shape index: {}]   ;;  %s8487_s5 = inlined_call_operand.vmem [shape: f32[8,8], index: 5, kind: input, shape index: {}]   ;;  %s8488_s6 = inlined_call_operand.vmem [shape: f32[8,1], index: 6, kind: input, shape index: {}]   ;;  %s8489_s7 = inlined_call_operand.vmem [shape: f32[2,8,1024], index: 7, kind: output, shape index: {}]  }
   0x1 LB: > { %s6612_s25 = sadd.s32 4294967295, %s6864_s24   ;;  %p6616_p0 = scmp.ge.s32.totalorder %s6864_s24, 1  ;;  %s6864_s24 = sphi %s6916_s24, %s17_s24  }
   0x2   : > { %p237_p1 = scmp.lt.s32.totalorder %s6864_s24, 3 }
   0x4   : > { %p238_p2 = pnand %p6616_p0, %p237_p1 }
   0x6   : > { %241 = sbr.rel (%p238_p2) target bundleno = 901 (0x385), region = 48 }
   0xb   : > { %p269_p3 = scmp.lt.s32.totalorder %s6612_s25, 1  ;;  %s6866_s30 = smov 33   ;;  %v6867_v4 = vmov 0.0   ;;  %v316_v9 = vlaneseq  ;;  %v6875_v13 = vmov 0   ;;  %v330_v14 = vld [vmem:[%s8483_s1 + $0x18] sm:$0xff]  ;;  %v328_v15 = vld [vmem:[%s8483_s1 + $0x8] sm:$0xff] }
   0xc   : > { %483 = vmatprep.mubr.f32.mxu1 %v6867_v4  ;;  %412 = vmatprep.mubr.f32.mxu0 %v6867_v4  ;;  %s6868_s8 = smov 32   ;;  %s6869_s9 = smov 31   ;;  %v329_v19 = vld [vmem:[%s8483_s1 + $0x10] sm:$0xff]  ;;  %v327_v25 = vld [vmem:[%s8483_s1] sm:$0xff]  ;;  %v334_v26 = vld [vmem:[%s8483_s1 + $0x38] sm:$0xff]  ;;  %vm344_vm1 = vcmask 64512  }
   0xd   : > { %s8511_s25 = smov (!%p269_p3, %s6612_s25), 1  ;;  %s6870_s10 = smov 1   ;;  %v7072_v10 = vand.u32 127, %v316_v9  ;;  %6791 = vset.pattern.permute.xlu0 %v6875_v13  ;;  %v343_v29 = vld [vmem:[%s8484_s2] sm:$0xff]  ;;  %v333_v32 = vld [vmem:[%s8483_s1 + $0x30] sm:$0xff]  ;;  %v332_v36 = vld [vmem:[%s8483_s1 + $0x28] sm:$0xff] }
   0xe   : > { %s6771_s26 = sshll.u32 %s8511_s25, 6  ;;  %s6871_s11 = smov 127   ;;  %v331_v35 = vld [vmem:[%s8483_s1 + $0x20] sm:$0xff]  ;;  %v6628_v46 = vld [vmem:[%s8483_s1 + $0x58] sm:$0xff]  ;;  %v6627_v51 = vld [vmem:[%s8483_s1 + $0x50] sm:$0xff] }
   0xf   : > { %s6932_s29 = scalar_lea.vmem %s8482_s0, %s6771_s26  ;;  %s6872_s12 = smov 97   ;;  %vm318_vm0 = vcmp.lt.s32.totalorder %v7072_v10, 33  ;;  %v279_v37 = vld [vmem:[%s8485_s3] sm:$0xff]  ;;  %vm656_vm2 = vcmp.lt.s32.totalorder %v7072_v10, 32  ;;  %v6626_v52 = vld [vmem:[%s8483_s1 + $0x48] sm:$0xff]  ;;  %v6632_v61 = vld [vmem:[%s8483_s1 + $0x78] sm:$0xff] }
  0x10   : > { %v6935_v0 = vld [vmem:[%s6932_s29 + $0x10] sm:$0xff]  ;;  %v6938_v1 = vld [vmem:[%s6932_s29 + $0x8] sm:$0xff]  ;;  %v6945_v2 = vld [vmem:[%s6932_s29 + $0x18] sm:$0xff]  ;;  %s6873_s13 = smov 96   ;;  %s6874_s14 = smov 95   ;;  %vm995_vm3 = vcmp.lt.s32.totalorder %v7072_v10, 31 }
  0x11   : > { %304 = vrot.lane.b32.xlu0 %v6935_v0, %s6866_s30  ;;  %302 = vrot.lane.b32.xlu1 %v6938_v1, %s6866_s30  ;;  %v6948_v3 = vld [vmem:[%s6932_s29] sm:$0xff]  ;;  %v6957_v5 = vld [vmem:[%s6932_s29 + $0x30] sm:$0xff]  ;;  %vm1334_vm4 = vcmp.lt.s32.totalorder %v7072_v10, 1  ;;  %vm1970_vm5 = vcmp.lt.s32.totalorder %v7072_v10, 127  ;;  %vm2309_vm6 = vcmp.lt.s32.totalorder %v7072_v10, 97  ;;  %vm2648_vm7 = vcmp.lt.s32.totalorder %v7072_v10, 96  ;;  %s8467_s23 = scalar_lea.vmem %s8489_s7, %s6771_s26 }
  0x12   : > { %v6960_v6 = vld [vmem:[%s6932_s29 + $0x38] sm:$0xff]  ;;  %v6967_v7 = vld [vmem:[%s6932_s29 + $0x28] sm:$0xff]  ;;  %v6970_v8 = vld [vmem:[%s6932_s29 + $0x20] sm:$0xff]  ;;  %vm2987_vm8 = vcmp.lt.s32.totalorder %v7072_v10, 95 }
  0x13   : > { %v6633_v59 = vld [vmem:[%s8484_s2 + $0x8] sm:$0xff]  ;;  %v6625_v60 = vld [vmem:[%s8483_s1 + $0x40] sm:$0xff] }
  0x15   : > { %306 = vrot.lane.b32.xlu0 %v6945_v2, %s6866_s30  ;;  %300 = vrot.lane.b32.xlu1 %v6948_v3, %s6866_s30 }
  0x19   : > { %312 = vrot.lane.b32.xlu0 %v6957_v5, %s6866_s30  ;;  %314 = vrot.lane.b32.xlu1 %v6960_v6, %s6866_s30 }
  0x1d   : > { %310 = vrot.lane.b32.xlu0 %v6967_v7, %s6866_s30  ;;  %308 = vrot.lane.b32.xlu1 %v6970_v8, %s6866_s30 }
  0x21   : > { %644 = vrot.lane.b32.xlu0 %v6935_v0, %s6868_s8  ;;  %646 = vrot.lane.b32.xlu1 %v6945_v2, %s6868_s8 }
  0x25   : > { %642 = vrot.lane.b32.xlu0 %v6938_v1, %s6868_s8  ;;  %640 = vrot.lane.b32.xlu1 %v6948_v3, %s6868_s8 }
  0x29   : > { %652 = vrot.lane.b32.xlu0 %v6957_v5, %s6868_s8  ;;  %654 = vrot.lane.b32.xlu1 %v6960_v6, %s6868_s8 }
  0x2d   : > { %650 = vrot.lane.b32.xlu0 %v6967_v7, %s6868_s8  ;;  %648 = vrot.lane.b32.xlu1 %v6970_v8, %s6868_s8 }
  0x31   : > { %983 = vrot.lane.b32.xlu0 %v6935_v0, %s6869_s9  ;;  %985 = vrot.lane.b32.xlu1 %v6945_v2, %s6869_s9 }
  0x35   : > { %981 = vrot.lane.b32.xlu0 %v6938_v1, %s6869_s9  ;;  %979 = vrot.lane.b32.xlu1 %v6948_v3, %s6869_s9 }
  0x39   : > { %991 = vrot.lane.b32.xlu0 %v6957_v5, %s6869_s9  ;;  %993 = vrot.lane.b32.xlu1 %v6960_v6, %s6869_s9 }
  0x3d   : > { %989 = vrot.lane.b32.xlu0 %v6967_v7, %s6869_s9  ;;  %987 = vrot.lane.b32.xlu1 %v6970_v8, %s6869_s9 }
  0x41   : > { %1322 = vrot.lane.b32.xlu0 %v6935_v0, %s6870_s10  ;;  %1324 = vrot.lane.b32.xlu1 %v6945_v2, %s6870_s10 }
  0x45   : > { %1320 = vrot.lane.b32.xlu0 %v6938_v1, %s6870_s10  ;;  %1318 = vrot.lane.b32.xlu1 %v6948_v3, %s6870_s10 }
  0x49   : > { %1330 = vrot.lane.b32.xlu0 %v6957_v5, %s6870_s10  ;;  %1332 = vrot.lane.b32.xlu1 %v6960_v6, %s6870_s10 }
  0x4d   : > { %1328 = vrot.lane.b32.xlu0 %v6967_v7, %s6870_s10  ;;  %1326 = vrot.lane.b32.xlu1 %v6970_v8, %s6870_s10 }
  0x51   : > { %1960 = vrot.lane.b32.xlu0 %v6945_v2, %s6871_s11  ;;  %1962 = vrot.lane.b32.xlu1 %v6970_v8, %s6871_s11 }
  0x55   : > { %1958 = vrot.lane.b32.xlu0 %v6935_v0, %s6871_s11  ;;  %1956 = vrot.lane.b32.xlu1 %v6938_v1, %s6871_s11 }
  0x59   : > { %1954 = vrot.lane.b32.xlu0 %v6948_v3, %s6871_s11  ;;  %1968 = vrot.lane.b32.xlu1 %v6960_v6, %s6871_s11 }
  0x5d   : > { %1966 = vrot.lane.b32.xlu0 %v6957_v5, %s6871_s11  ;;  %1964 = vrot.lane.b32.xlu1 %v6967_v7, %s6871_s11 }
  0x61   : > { %2299 = vrot.lane.b32.xlu0 %v6945_v2, %s6872_s12  ;;  %2301 = vrot.lane.b32.xlu1 %v6970_v8, %s6872_s12 }
  0x65   : > { %2297 = vrot.lane.b32.xlu0 %v6935_v0, %s6872_s12  ;;  %2295 = vrot.lane.b32.xlu1 %v6938_v1, %s6872_s12 }
  0x69   : > { %2293 = vrot.lane.b32.xlu0 %v6948_v3, %s6872_s12  ;;  %2307 = vrot.lane.b32.xlu1 %v6960_v6, %s6872_s12 }
  0x6d   : > { %2305 = vrot.lane.b32.xlu0 %v6957_v5, %s6872_s12  ;;  %2303 = vrot.lane.b32.xlu1 %v6967_v7, %s6872_s12 }
  0x71   : > { %2638 = vrot.lane.b32.xlu0 %v6945_v2, %s6873_s13  ;;  %2640 = vrot.lane.b32.xlu1 %v6970_v8, %s6873_s13 }
  0x75   : > { %2636 = vrot.lane.b32.xlu0 %v6935_v0, %s6873_s13  ;;  %2634 = vrot.lane.b32.xlu1 %v6938_v1, %s6873_s13 }
  0x79   : > { %2632 = vrot.lane.b32.xlu0 %v6948_v3, %s6873_s13  ;;  %2646 = vrot.lane.b32.xlu1 %v6960_v6, %s6873_s13 }
  0x7d   : > { %2644 = vrot.lane.b32.xlu0 %v6957_v5, %s6873_s13  ;;  %2642 = vrot.lane.b32.xlu1 %v6967_v7, %s6873_s13 }
  0x81   : > { %2977 = vrot.lane.b32.xlu0 %v6945_v2, %s6874_s14  ;;  %2979 = vrot.lane.b32.xlu1 %v6970_v8, %s6874_s14 }
  0x83   : > { %v305_v11 = vpop.permute.xlu0 %304  ;;  %v303_v12 = vpop.permute.xlu1 %302 }
  0x84   : > { %v324_v18 = vsel %vm318_vm0, %v303_v12, %v305_v11 }
  0x85   : > { %2975 = vrot.lane.b32.xlu0 %v6935_v0, %s6874_s14  ;;  %2973 = vrot.lane.b32.xlu1 %v6938_v1, %s6874_s14  ;;  %v337_v24 = vmul.f32 %v329_v19, %v324_v18 }
  0x87   : > { %v307_v16 = vpop.permute.xlu0 %306  ;;  %v301_v17 = vpop.permute.xlu1 %300 }
  0x88   : > { %v323_v20 = vsel %vm318_vm0, %v305_v11, %v307_v16  ;;  %v325_v21 = vsel %vm318_vm0, %v301_v17, %v303_v12 }
  0x89   : > { %2971 = vrot.lane.b32.xlu0 %v6948_v3, %s6874_s14  ;;  %2985 = vrot.lane.b32.xlu1 %v6960_v6, %s6874_s14  ;;  %v338_v22 = vmul.f32 %v330_v14, %v323_v20  ;;  %v336_v23 = vmul.f32 %v328_v15, %v325_v21  ;;  %v6631_v14 = vld [vmem:[%s8483_s1 + $0x70] sm:$0xff]  ;;  %v6629_v15 = vld [vmem:[%s8483_s1 + $0x60] sm:$0xff] }
  0x8b   : > { %449 = vmatprep.subr.mxu1 %v338_v22  ;;  %v313_v27 = vpop.permute.xlu0 %312  ;;  %378 = vmatprep.subr.mxu0 %v336_v23  ;;  %v315_v28 = vpop.permute.xlu1 %314 }
  0x8c   : > { %v319_v30 = vsel %vm318_vm0, %v313_v27, %v315_v28  ;;  %450 = vmatpush1.msra.mxu1 %v337_v24  ;;  %v326_v31 = vsel %vm318_vm0, %v315_v28, %v301_v17 }
  0x8d   : > { %2983 = vrot.lane.b32.xlu0 %v6957_v5, %s6874_s14  ;;  %2981 = vrot.lane.b32.xlu1 %v6967_v7, %s6874_s14  ;;  %v335_v33 = vmul.f32 %v327_v25, %v326_v31  ;;  %v342_v34 = vmul.f32 %v334_v26, %v319_v30  ;;  %v6641_v25 = vld [vmem:[%s8483_s1 + $0x98] sm:$0xff]  ;;  %v6640_v30 = vld [vmem:[%s8483_s1 + $0x90] sm:$0xff] }
  0x8e   : > { %6622 = vmatmul.mubr.msk.f32.vlgmr.msra.gmra.mxu1 %vm344_vm1, %v343_v29  ;;  %v6639_v31 = vld [vmem:[%s8483_s1 + $0x88] sm:$0xff] }
  0x8f   : > { %v311_v38 = vpop.permute.xlu0 %310  ;;  %379 = vmatpush1.msra.mxu0 %v335_v33  ;;  %591 = vmatprep.subr.mxu1 %v342_v34  ;;  %v309_v39 = vpop.permute.xlu1 %308 }
  0x90   : > { %v320_v40 = vsel %vm318_vm0, %v311_v38, %v313_v27  ;;  %v321_v41 = vsel %vm318_vm0, %v309_v39, %v311_v38  ;;  %v322_v42 = vsel %vm318_vm0, %v307_v16, %v309_v39  ;;  %6621 = vmatmul.mubr.msk.f32.vlgmr.msra.gmra.mxu0 %vm344_vm1, %v343_v29  ;;  %625 = vmatprep.mubr.f32.mxu1 %v6867_v4  ;;  %v6630_v16 = vld [vmem:[%s8483_s1 + $0x68] sm:$0xff]  ;;  %v6646_v38 = vld [vmem:[%s8484_s2 + $0x10] sm:$0xff]  ;;  %v6638_v39 = vld [vmem:[%s8483_s1 + $0x80] sm:$0xff] }
  0x91   : > { %v341_v43 = vmul.f32 %v333_v32, %v320_v40  ;;  %v339_v44 = vmul.f32 %v331_v35, %v322_v42  ;;  %v340_v45 = vmul.f32 %v332_v36, %v321_v41  ;;  %554 = vmatprep.mubr.f32.mxu0 %v6867_v4  ;;  %282 = vperm.xlu0 %6791, %v279_v37   ;;  %v6645_v40 = vld [vmem:[%s8483_s1 + $0xb8] sm:$0xff] }
  0x93   : > { %v645_v47 = vpop.permute.xlu0 %644  ;;  %520 = vmatprep.subr.mxu0 %v340_v45  ;;  %592 = vmatpush1.msra.mxu1 %v341_v43  ;;  %v647_v48 = vpop.permute.xlu1 %646 }
  0x94   : > { %v661_v49 = vsel %vm656_vm2, %v645_v47, %v647_v48  ;;  %521 = vmatpush1.msra.mxu0 %v339_v44  ;;  %6624 = vmatmul.mubr.msk.f32.vlgmr.msra.gmra.mxu1 %vm344_vm1, %v343_v29 }
  0x95   : > { %v677_v50 = vmul.f32 %v6628_v46, %v661_v49  ;;  %6623 = vmatmul.mubr.msk.f32.vlgmr.msra.gmra.mxu0 %vm344_vm1, %v343_v29  ;;  %822 = vmatprep.mubr.f32.mxu1 %v6867_v4  ;;  %v6643_v49 = vld [vmem:[%s8483_s1 + $0xa8] sm:$0xff] }
  0x96   : > { %751 = vmatprep.mubr.f32.mxu0 %v6867_v4 }
  0x97   : > { %v643_v53 = vpop.permute.xlu0 %642  ;;  %788 = vmatprep.subr.mxu1 %v677_v50  ;;  %v641_v54 = vpop.permute.xlu1 %640 }
  0x98   : > { %v662_v55 = vsel %vm656_vm2, %v643_v53, %v645_v47  ;;  %v663_v56 = vsel %vm656_vm2, %v641_v54, %v643_v53  ;;  %v6644_v47 = vld [vmem:[%s8483_s1 + $0xb0] sm:$0xff] }
  0x99   : > { %v676_v57 = vmul.f32 %v6627_v51, %v662_v55  ;;  %v675_v58 = vmul.f32 %v6626_v52, %v663_v56 }
  0x9b   : > { %v653_v62 = vpop.permute.xlu0 %652  ;;  %717 = vmatprep.subr.mxu0 %v675_v58  ;;  %789 = vmatpush1.msra.mxu1 %v676_v57  ;;  %v655_v63 = vpop.permute.xlu1 %654  ;;  %v6654_v58 = vld [vmem:[%s8483_s1 + $0xd8] sm:$0xff] }
  0x9c   : > { %v657_v9 = vsel %vm656_vm2, %v653_v62, %v655_v63  ;;  %v664_v11 = vsel %vm656_vm2, %v655_v63, %v641_v54  ;;  %6635 = vmatmul.mubr.msk.f32.vlgmr.msra.gmra.mxu1 %vm344_vm1, %v6633_v59  ;;  %v6653_v63 = vld [vmem:[%s8483_s1 + $0xd0] sm:$0xff] }
  0x9d   : > { %v674_v12 = vmul.f32 %v6625_v60, %v664_v11  ;;  %v681_v13 = vmul.f32 %v6632_v61, %v657_v9  ;;  %964 = vmatprep.mubr.f32.mxu1 %v6867_v4  ;;  %v6652_v9 = vld [vmem:[%s8483_s1 + $0xc8] sm:$0xff] }
  0x9f   : > { %v651_v17 = vpop.permute.xlu0 %650  ;;  %718 = vmatpush1.msra.mxu0 %v674_v12  ;;  %930 = vmatprep.subr.mxu1 %v681_v13  ;;  %v649_v18 = vpop.permute.xlu1 %648 }
  0xa0   : > { %v658_v19 = vsel %vm656_vm2, %v651_v17, %v653_v62  ;;  %v659_v20 = vsel %vm656_vm2, %v649_v18, %v651_v17  ;;  %v660_v21 = vsel %vm656_vm2, %v647_v48, %v649_v18  ;;  %6634 = vmatmul.mubr.msk.f32.vlgmr.msra.gmra.mxu0 %vm344_vm1, %v6633_v59  ;;  %v6642_v48 = vld [vmem:[%s8483_s1 + $0xa0] sm:$0xff]  ;;  %v6659_v17 = vld [vmem:[%s8484_s2 + $0x18] sm:$0xff] }
  0xa1   : > { %v680_v22 = vmul.f32 %v6631_v14, %v658_v19  ;;  %v678_v23 = vmul.f32 %v6629_v15, %v660_v21  ;;  %v679_v24 = vmul.f32 %v6630_v16, %v659_v20  ;;  %893 = vmatprep.mubr.f32.mxu0 %v6867_v4  ;;  %v6651_v18 = vld [vmem:[%s8483_s1 + $0xc0] sm:$0xff]  ;;  %v6658_v19 = vld [vmem:[%s8483_s1 + $0xf8] sm:$0xff] }
  0xa3   : > { %v984_v26 = vpop.permute.xlu0 %983  ;;  %859 = vmatprep.subr.mxu0 %v679_v24  ;;  %931 = vmatpush1.msra.mxu1 %v680_v22  ;;  %v986_v27 = vpop.permute.xlu1 %985 }
  0xa4   : > { %v1000_v28 = vsel %vm995_vm3, %v984_v26, %v986_v27  ;;  %860 = vmatpush1.msra.mxu0 %v678_v23  ;;  %6637 = vmatmul.mubr.msk.f32.vlgmr.msra.gmra.mxu1 %vm344_vm1, %v6633_v59 }
  0xa5   : > { %v1016_v29 = vmul.f32 %v6641_v25, %v1000_v28  ;;  %6636 = vmatmul.mubr.msk.f32.vlgmr.msra.gmra.mxu0 %vm344_vm1, %v6633_v59  ;;  %1161 = vmatprep.mubr.f32.mxu1 %v6867_v4  ;;  %v6656_v28 = vld [vmem:[%s8483_s1 + $0xe8] sm:$0xff] }
  0xa6   : > { %1090 = vmatprep.mubr.f32.mxu0 %v6867_v4 }
  0xa7   : > { %v982_v32 = vpop.permute.xlu0 %981  ;;  %1127 = vmatprep.subr.mxu1 %v1016_v29  ;;  %v980_v33 = vpop.permute.xlu1 %979 }
  0xa8   : > { %v1001_v34 = vsel %vm995_vm3, %v982_v32, %v984_v26  ;;  %v1002_v35 = vsel %vm995_vm3, %v980_v33, %v982_v32  ;;  %v6657_v26 = vld [vmem:[%s8483_s1 + $0xf0] sm:$0xff] }
  0xa9   : > { %v1015_v36 = vmul.f32 %v6640_v30, %v1001_v34  ;;  %v1014_v37 = vmul.f32 %v6639_v31, %v1002_v35 }
  0xab   : > { %v992_v41 = vpop.permute.xlu0 %991  ;;  %1056 = vmatprep.subr.mxu0 %v1014_v37  ;;  %1128 = vmatpush1.msra.mxu1 %v1015_v36  ;;  %v994_v42 = vpop.permute.xlu1 %993 }
  0xac   : > { %v996_v43 = vsel %vm995_vm3, %v992_v41, %v994_v42  ;;  %v1003_v44 = vsel %vm995_vm3, %v994_v42, %v980_v33  ;;  %6648 = vmatmul.mubr.msk.f32.vlgmr.msra.gmra.mxu1 %vm344_vm1, %v6646_v38  ;;  %v6664_v42 = vld [vmem:[%s8484_s2 + $0x20] sm:$0xff] }
  0xad   : > { %v1013_v45 = vmul.f32 %v6638_v39, %v1003_v44  ;;  %v1020_v46 = vmul.f32 %v6645_v40, %v996_v43  ;;  %1303 = vmatprep.mubr.f32.mxu1 %v6867_v4  ;;  %v6672_v39 = vld [vmem:[%s8483_s1 + $0x158] sm:$0xff]  ;;  %v6671_v43 = vld [vmem:[%s8483_s1 + $0x150] sm:$0xff] }
  0xaf   : > { %v990_v50 = vpop.permute.xlu0 %989  ;;  %1057 = vmatpush1.msra.mxu0 %v1013_v45  ;;  %1269 = vmatprep.subr.mxu1 %v1020_v46  ;;  %v988_v51 = vpop.permute.xlu1 %987 }
  0xb0   : > { %v997_v52 = vsel %vm995_vm3, %v990_v50, %v992_v41  ;;  %v998_v53 = vsel %vm995_vm3, %v988_v51, %v990_v50  ;;  %v999_v54 = vsel %vm995_vm3, %v986_v27, %v988_v51  ;;  %6647 = vmatmul.mubr.msk.f32.vlgmr.msra.gmra.mxu0 %vm344_vm1, %v6646_v38  ;;  %v6655_v27 = vld [vmem:[%s8483_s1 + $0xe0] sm:$0xff]  ;;  %v6670_v41 = vld [vmem:[%s8483_s1 + $0x148] sm:$0xff] }
  0xb1   : > { %v1019_v55 = vmul.f32 %v6644_v47, %v997_v52  ;;  %v1017_v56 = vmul.f32 %v6642_v48, %v999_v54  ;;  %v1018_v57 = vmul.f32 %v6643_v49, %v998_v53  ;;  %1232 = vmatprep.mubr.f32.mxu0 %v6867_v4  ;;  %v6669_v51 = vld [vmem:[%s8483_s1 + $0x140] sm:$0xff]  ;;  %v6676_v52 = vld [vmem:[%s8483_s1 + $0x178] sm:$0xff] }
  0xb3   : > { %v1323_v59 = vpop.permute.xlu0 %1322  ;;  %1198 = vmatprep.subr.mxu0 %v1018_v57  ;;  %1270 = vmatpush1.msra.mxu1 %v1019_v55  ;;  %v1325_v60 = vpop.permute.xlu1 %1324 }
  0xb4   : > { %v1339_v61 = vsel %vm1334_vm4, %v1323_v59, %v1325_v60  ;;  %1199 = vmatpush1.msra.mxu0 %v1017_v56  ;;  %6650 = vmatmul.mubr.msk.f32.vlgmr.msra.gmra.mxu1 %vm344_vm1, %v6646_v38 }
  0xb5   : > { %v1355_v62 = vmul.f32 %v6654_v58, %v1339_v61  ;;  %6649 = vmatmul.mubr.msk.f32.vlgmr.msra.gmra.mxu0 %vm344_vm1, %v6646_v38  ;;  %1500 = vmatprep.mubr.f32.mxu1 %v6867_v4  ;;  %v6673_v58 = vld [vmem:[%s8483_s1 + $0x160] sm:$0xff] }
  0xb6   : > { %1429 = vmatprep.mubr.f32.mxu0 %v6867_v4 }
  0xb7   : > { %v1321_v11 = vpop.permute.xlu0 %1320  ;;  %1466 = vmatprep.subr.mxu1 %v1355_v62  ;;  %v1319_v12 = vpop.permute.xlu1 %1318 }
  0xb8   : > { %v1340_v13 = vsel %vm1334_vm4, %v1321_v11, %v1323_v59  ;;  %v1341_v14 = vsel %vm1334_vm4, %v1319_v12, %v1321_v11  ;;  %v6674_v59 = vld [vmem:[%s8483_s1 + $0x168] sm:$0xff] }
  0xb9   : > { %v1354_v15 = vmul.f32 %v6653_v63, %v1340_v13  ;;  %v1353_v16 = vmul.f32 %v6652_v9, %v1341_v14 }
  0xbb   : > { %v1331_v20 = vpop.permute.xlu0 %1330  ;;  %1395 = vmatprep.subr.mxu0 %v1353_v16  ;;  %1467 = vmatpush1.msra.mxu1 %v1354_v15  ;;  %v1333_v21 = vpop.permute.xlu1 %1332  ;;  %v6685_v15 = vld [vmem:[%s8483_s1 + $0x198] sm:$0xff] }
  0xbc   : > { %v1335_v22 = vsel %vm1334_vm4, %v1331_v20, %v1333_v21  ;;  %v1342_v23 = vsel %vm1334_vm4, %v1333_v21, %v1319_v12  ;;  %6661 = vmatmul.mubr.msk.f32.vlgmr.msra.gmra.mxu1 %vm344_vm1, %v6659_v17  ;;  %v6683_v21 = vld [vmem:[%s8483_s1 + $0x188] sm:$0xff] }
  0xbd   : > { %v1352_v24 = vmul.f32 %v6651_v18, %v1342_v23  ;;  %v1359_v25 = vmul.f32 %v6658_v19, %v1335_v22  ;;  %1642 = vmatprep.mubr.f32.mxu1 %v6867_v4 }
  0xbf   : > { %v1329_v29 = vpop.permute.xlu0 %1328  ;;  %1396 = vmatpush1.msra.mxu0 %v1352_v24  ;;  %1608 = vmatprep.subr.mxu1 %v1359_v25  ;;  %v1327_v30 = vpop.permute.xlu1 %1326 }
  0xc0   : > { %v1336_v31 = vsel %vm1334_vm4, %v1329_v29, %v1331_v20  ;;  %v1337_v32 = vsel %vm1334_vm4, %v1327_v30, %v1329_v29  ;;  %v1338_v33 = vsel %vm1334_vm4, %v1325_v60, %v1327_v30  ;;  %6660 = vmatmul.mubr.msk.f32.vlgmr.msra.gmra.mxu0 %vm344_vm1, %v6659_v17  ;;  %v6677_v60 = vld [vmem:[%s8484_s2 + $0x28] sm:$0xff]  ;;  %v6684_v20 = vld [vmem:[%s8483_s1 + $0x190] sm:$0xff]  ;;  %v6682_v29 = vld [vmem:[%s8483_s1 + $0x180] sm:$0xff] }
  0xc1   : > { %v1358_v34 = vmul.f32 %v6657_v26, %v1336_v31  ;;  %v1356_v35 = vmul.f32 %v6655_v27, %v1338_v33  ;;  %v1357_v36 = vmul.f32 %v6656_v28, %v1337_v32  ;;  %1571 = vmatprep.mubr.f32.mxu0 %v6867_v4  ;;  %v6690_v28 = vld [vmem:[%s8484_s2 + $0x30] sm:$0xff]  ;;  %v6689_v30 = vld [vmem:[%s8483_s1 + $0x1b8] sm:$0xff] }
  0xc3   : > { %v1961_v37 = vpop.permute.xlu0 %1960  ;;  %1537 = vmatprep.subr.mxu0 %v1357_v36  ;;  %1609 = vmatpush1.msra.mxu1 %v1358_v34  ;;  %v1963_v38 = vpop.permute.xlu1 %1962 }
  0xc4   : > { %1538 = vmatpush1.msra.mxu0 %v1356_v35  ;;  %6663 = vmatmul.mubr.msk.f32.vlgmr.msra.gmra.mxu1 %vm344_vm1, %v6659_v17  ;;  %v1974_v40 = vsel %vm1970_vm5, %v1961_v37, %v1963_v38 }
  0xc5   : > { %6662 = vmatmul.mubr.msk.f32.vlgmr.msra.gmra.mxu0 %vm344_vm1, %v6659_v17  ;;  %1763 = vmatprep.subr.mxu1 %v6945_v2  ;;  %v1991_v48 = vmul.f32 %v6672_v39, %v1974_v40  ;;  %v6687_v39 = vld [vmem:[%s8483_s1 + $0x1a8] sm:$0xff] }
  0xc6   : > { %1764 = vmatpush1.msra.mxu1 %v6935_v0  ;;  %1692 = vmatprep.subr.mxu0 %v6938_v1 }
  0xc7   : > { %v1959_v44 = vpop.permute.xlu0 %1958  ;;  %1797 = vmatprep.mubr.f32.mxu1 %v6867_v4  ;;  %1905 = vmatprep.subr.mxu1 %v6960_v6  ;;  %v1957_v45 = vpop.permute.xlu1 %1956 }
  0xc8   : > { %v1975_v46 = vsel %vm1970_vm5, %v1959_v44, %v1961_v37  ;;  %v1976_v47 = vsel %vm1970_vm5, %v1957_v45, %v1959_v44  ;;  %1693 = vmatpush1.msra.mxu0 %v6948_v3  ;;  %1726 = vmatprep.mubr.f32.mxu0 %v6867_v4  ;;  %v6688_v37 = vld [vmem:[%s8483_s1 + $0x1b0] sm:$0xff] }
  0xc9   : > { %v1989_v49 = vmul.f32 %v6670_v41, %v1976_v47  ;;  %6666 = vmatmul.mubr.msk.f32.vlgmr.msra.gmra.mxu1 %vm344_vm1, %v6664_v42  ;;  %6665 = vmatmul.mubr.msk.f32.vlgmr.msra.gmra.mxu0 %vm344_vm1, %v6664_v42  ;;  %v1990_v50 = vmul.f32 %v6671_v43, %v1975_v46 }
  0xca   : > { %1906 = vmatpush1.msra.mxu1 %v6957_v5  ;;  %1834 = vmatprep.subr.mxu0 %v6967_v7 }
  0xcb   : > { %2102 = vmatprep.subr.mxu1 %v1991_v48  ;;  %1835 = vmatpush1.msra.mxu0 %v6970_v8  ;;  %v1955_v53 = vpop.permute.xlu0 %1954  ;;  %v1969_v54 = vpop.permute.xlu1 %1968  ;;  %v6675_v8 = vld [vmem:[%s8483_s1 + $0x170] sm:$0xff]  ;;  %v6698_v48 = vld [vmem:[%s8483_s1 + $0x1d8] sm:$0xff] }
  0xcc   : > { %v1977_v55 = vsel %vm1970_vm5, %v1955_v53, %v1957_v45  ;;  %1939 = vmatprep.mubr.f32.mxu1 %v6867_v4  ;;  %2031 = vmatprep.subr.mxu0 %v1989_v49  ;;  %v1978_v5 = vsel %vm1970_vm5, %v1969_v54, %v1955_v53  ;;  %v6697_v53 = vld [vmem:[%s8483_s1 + $0x1d0] sm:$0xff] }
  0xcd   : > { %v1988_v56 = vmul.f32 %v6669_v51, %v1977_v55  ;;  %v1995_v57 = vmul.f32 %v6676_v52, %v1978_v5  ;;  %1868 = vmatprep.mubr.f32.mxu0 %v6867_v4  ;;  %6668 = vmatmul.mubr.msk.f32.vlgmr.msra.gmra.mxu1 %vm344_vm1, %v6664_v42 }
  0xce   : > { %2103 = vmatpush1.msra.mxu1 %v1990_v50  ;;  %6667 = vmatmul.mubr.msk.f32.vlgmr.msra.gmra.mxu0 %vm344_vm1, %v6664_v42 }
  0xcf   : > { %v1967_v61 = vpop.permute.xlu0 %1966  ;;  %2032 = vmatpush1.msra.mxu0 %v1988_v56  ;;  %2136 = vmatprep.mubr.f32.mxu1 %v6867_v4  ;;  %v1965_v62 = vpop.permute.xlu1 %1964 }
  0xd0   : > { %v1971_v63 = vsel %vm1970_vm5, %v1967_v61, %v1969_v54  ;;  %2244 = vmatprep.subr.mxu1 %v1995_v57  ;;  %v1972_v9 = vsel %vm1970_vm5, %v1965_v62, %v1967_v61  ;;  %v1973_v11 = vsel %vm1970_vm5, %v1963_v38, %v1965_v62  ;;  %2065 = vmatprep.mubr.f32.mxu0 %v6867_v4  ;;  %v6686_v38 = vld [vmem:[%s8483_s1 + $0x1a0] sm:$0xff]  ;;  %v6696_v54 = vld [vmem:[%s8483_s1 + $0x1c8] sm:$0xff]  ;;  %v6702_v61 = vld [vmem:[%s8483_s1 + $0x1f8] sm:$0xff] }
  0xd1   : > { %v1994_v12 = vmul.f32 %v6675_v8, %v1971_v63  ;;  %v1992_v13 = vmul.f32 %v6673_v58, %v1973_v11  ;;  %v1993_v14 = vmul.f32 %v6674_v59, %v1972_v9  ;;  %6679 = vmatmul.mubr.msk.f32.vlgmr.msra.gmra.mxu1 %vm344_vm1, %v6677_v60  ;;  %v6703_v59 = vld [vmem:[%s8484_s2 + $0x38] sm:$0xff] }
  0xd2   : > { %6678 = vmatmul.mubr.msk.f32.vlgmr.msra.gmra.mxu0 %vm344_vm1, %v6677_v60  ;;  %2278 = vmatprep.mubr.f32.mxu1 %v6867_v4 }
  0xd3   : > { %v2300_v16 = vpop.permute.xlu0 %2299  ;;  %2173 = vmatprep.subr.mxu0 %v1993_v14  ;;  %2245 = vmatpush1.msra.mxu1 %v1994_v12  ;;  %v2302_v17 = vpop.permute.xlu1 %2301  ;;  %v6701_v14 = vld [vmem:[%s8483_s1 + $0x1f0] sm:$0xff] }
  0xd4   : > { %v2313_v18 = vsel %vm2309_vm6, %v2300_v16, %v2302_v17  ;;  %2174 = vmatpush1.msra.mxu0 %v1992_v13  ;;  %2207 = vmatprep.mubr.f32.mxu0 %v6867_v4 }
  0xd5   : > { %v2330_v19 = vmul.f32 %v6685_v15, %v2313_v18  ;;  %6681 = vmatmul.mubr.msk.f32.vlgmr.msra.gmra.mxu1 %vm344_vm1, %v6677_v60  ;;  %v6699_v15 = vld [vmem:[%s8483_s1 + $0x1e0] sm:$0xff] }
  0xd6   : > { %6680 = vmatmul.mubr.msk.f32.vlgmr.msra.gmra.mxu0 %vm344_vm1, %v6677_v60  ;;  %2475 = vmatprep.mubr.f32.mxu1 %v6867_v4  ;;  %v6695_v60 = vld [vmem:[%s8483_s1 + $0x1c0] sm:$0xff] }
  0xd7   : > { %v2298_v22 = vpop.permute.xlu0 %2297  ;;  %2441 = vmatprep.subr.mxu1 %v2330_v19  ;;  %v2296_v23 = vpop.permute.xlu1 %2295  ;;  %2404 = vmatprep.mubr.f32.mxu0 %v6867_v4 }
  0xd8   : > { %v2314_v24 = vsel %vm2309_vm6, %v2298_v22, %v2300_v16  ;;  %v2315_v25 = vsel %vm2309_vm6, %v2296_v23, %v2298_v22  ;;  %v6700_v16 = vld [vmem:[%s8483_s1 + $0x1e8] sm:$0xff] }
  0xd9   : > { %v2329_v26 = vmul.f32 %v6684_v20, %v2314_v24  ;;  %v2328_v27 = vmul.f32 %v6683_v21, %v2315_v25  ;;  %v6711_v25 = vld [vmem:[%s8483_s1 + $0x218] sm:$0xff] }
  0xdb   : > { %v2294_v31 = vpop.permute.xlu0 %2293  ;;  %2370 = vmatprep.subr.mxu0 %v2328_v27  ;;  %2442 = vmatpush1.msra.mxu1 %v2329_v26  ;;  %v2308_v32 = vpop.permute.xlu1 %2307 }
  0xdc   : > { %v2316_v33 = vsel %vm2309_vm6, %v2294_v31, %v2296_v23  ;;  %v2317_v34 = vsel %vm2309_vm6, %v2308_v32, %v2294_v31  ;;  %6692 = vmatmul.mubr.msk.f32.vlgmr.msra.gmra.mxu1 %vm344_vm1, %v6690_v28  ;;  %v6709_v31 = vld [vmem:[%s8483_s1 + $0x208] sm:$0xff] }
  0xdd   : > { %v2327_v35 = vmul.f32 %v6682_v29, %v2316_v33  ;;  %v2334_v36 = vmul.f32 %v6689_v30, %v2317_v34  ;;  %2617 = vmatprep.mubr.f32.mxu1 %v6867_v4  ;;  %v6710_v30 = vld [vmem:[%s8483_s1 + $0x210] sm:$0xff] }
  0xdf   : > { %v2306_v40 = vpop.permute.xlu0 %2305  ;;  %2371 = vmatpush1.msra.mxu0 %v2327_v35  ;;  %2583 = vmatprep.subr.mxu1 %v2334_v36  ;;  %v2304_v41 = vpop.permute.xlu1 %2303 }
  0xe0   : > { %v2310_v42 = vsel %vm2309_vm6, %v2306_v40, %v2308_v32  ;;  %v2311_v43 = vsel %vm2309_vm6, %v2304_v41, %v2306_v40  ;;  %v2312_v44 = vsel %vm2309_vm6, %v2302_v17, %v2304_v41  ;;  %6691 = vmatmul.mubr.msk.f32.vlgmr.msra.gmra.mxu0 %vm344_vm1, %v6690_v28  ;;  %v6715_v40 = vld [vmem:[%s8483_s1 + $0x238] sm:$0xff] }
  0xe1   : > { %v2333_v45 = vmul.f32 %v6688_v37, %v2310_v42  ;;  %v2331_v46 = vmul.f32 %v6686_v38, %v2312_v44  ;;  %v2332_v47 = vmul.f32 %v6687_v39, %v2311_v43  ;;  %2546 = vmatprep.mubr.f32.mxu0 %v6867_v4  ;;  %v6716_v38 = vld [vmem:[%s8484_s2 + $0x40] sm:$0xff] }
  0xe2   : > { %v6708_v39 = vld [vmem:[%s8483_s1 + $0x200] sm:$0xff] }
  0xe3   : > { %v2639_v49 = vpop.permute.xlu0 %2638  ;;  %2512 = vmatprep.subr.mxu0 %v2332_v47  ;;  %2584 = vmatpush1.msra.mxu1 %v2333_v45  ;;  %v2641_v50 = vpop.permute.xlu1 %2640  ;;  %v6714_v47 = vld [vmem:[%s8483_s1 + $0x230] sm:$0xff] }
  0xe4   : > { %v2652_v51 = vsel %vm2648_vm7, %v2639_v49, %v2641_v50  ;;  %2513 = vmatpush1.msra.mxu0 %v2331_v46  ;;  %6694 = vmatmul.mubr.msk.f32.vlgmr.msra.gmra.mxu1 %vm344_vm1, %v6690_v28 }
  0xe5   : > { %v2669_v52 = vmul.f32 %v6698_v48, %v2652_v51  ;;  %6693 = vmatmul.mubr.msk.f32.vlgmr.msra.gmra.mxu0 %vm344_vm1, %v6690_v28  ;;  %2814 = vmatprep.mubr.f32.mxu1 %v6867_v4  ;;  %v6712_v48 = vld [vmem:[%s8483_s1 + $0x220] sm:$0xff] }
  0xe6   : > { %2743 = vmatprep.mubr.f32.mxu0 %v6867_v4 }
  0xe7   : > { %v2637_v55 = vpop.permute.xlu0 %2636  ;;  %2780 = vmatprep.subr.mxu1 %v2669_v52  ;;  %v2635_v5 = vpop.permute.xlu1 %2634 }
  0xe8   : > { %v2653_v56 = vsel %vm2648_vm7, %v2637_v55, %v2639_v49  ;;  %v2654_v57 = vsel %vm2648_vm7, %v2635_v5, %v2637_v55  ;;  %v6713_v49 = vld [vmem:[%s8483_s1 + $0x228] sm:$0xff] }
  0xe9   : > { %v2668_v8 = vmul.f32 %v6697_v53, %v2653_v56  ;;  %v2667_v58 = vmul.f32 %v6696_v54, %v2654_v57 }
  0xeb   : > { %v2633_v62 = vpop.permute.xlu0 %2632  ;;  %2709 = vmatprep.subr.mxu0 %v2667_v58  ;;  %2781 = vmatpush1.msra.mxu1 %v2668_v8  ;;  %v2647_v63 = vpop.permute.xlu1 %2646 }
  0xec   : > { %v2655_v9 = vsel %vm2648_vm7, %v2633_v62, %v2635_v5  ;;  %v2656_v11 = vsel %vm2648_vm7, %v2647_v63, %v2633_v62  ;;  %6705 = vmatmul.mubr.msk.f32.vlgmr.msra.gmra.mxu1 %vm344_vm1, %v6703_v59 }
  0xed   : > { %v2666_v12 = vmul.f32 %v6695_v60, %v2655_v9  ;;  %v2673_v13 = vmul.f32 %v6702_v61, %v2656_v11  ;;  %2956 = vmatprep.mubr.f32.mxu1 %v6867_v4 }
  0xef   : > { %v2645_v17 = vpop.permute.xlu0 %2644  ;;  %2710 = vmatpush1.msra.mxu0 %v2666_v12  ;;  %2922 = vmatprep.subr.mxu1 %v2673_v13  ;;  %v2643_v18 = vpop.permute.xlu1 %2642 }
  0xf0   : > { %v2649_v19 = vsel %vm2648_vm7, %v2645_v17, %v2647_v63  ;;  %v2650_v20 = vsel %vm2648_vm7, %v2643_v18, %v2645_v17  ;;  %v2651_v21 = vsel %vm2648_vm7, %v2641_v50, %v2643_v18  ;;  %6704 = vmatmul.mubr.msk.f32.vlgmr.msra.gmra.mxu0 %vm344_vm1, %v6703_v59 }
  0xf1   : > { %v2672_v22 = vmul.f32 %v6701_v14, %v2649_v19  ;;  %v2670_v23 = vmul.f32 %v6699_v15, %v2651_v21  ;;  %v2671_v24 = vmul.f32 %v6700_v16, %v2650_v20  ;;  %2885 = vmatprep.mubr.f32.mxu0 %v6867_v4 }
  0xf3   : > { %v2978_v26 = vpop.permute.xlu0 %2977  ;;  %2851 = vmatprep.subr.mxu0 %v2671_v24  ;;  %2923 = vmatpush1.msra.mxu1 %v2672_v22  ;;  %v2980_v27 = vpop.permute.xlu1 %2979  ;;  %v291_v24 = vld [vmem:[%s8487_s5] sm:$0xff] }
  0xf4   : > { %v2991_v28 = vsel %vm2987_vm8, %v2978_v26, %v2980_v27  ;;  %2852 = vmatpush1.msra.mxu0 %v2670_v23  ;;  %6707 = vmatmul.mubr.msk.f32.vlgmr.msra.gmra.mxu1 %vm344_vm1, %v6703_v59 }
  0xf5   : > { %v3008_v29 = vmul.f32 %v6711_v25, %v2991_v28  ;;  %6706 = vmatmul.mubr.msk.f32.vlgmr.msra.gmra.mxu0 %vm344_vm1, %v6703_v59  ;;  %3153 = vmatprep.mubr.f32.mxu1 %v6867_v4  ;;  %v6793_v28 = vld [vmem:[%s6932_s29 + $0x20] sm:$0xff] }
  0xf6   : > { %3082 = vmatprep.mubr.f32.mxu0 %v6867_v4 }
  0xf7   : > { %v2976_v32 = vpop.permute.xlu0 %2975  ;;  %3119 = vmatprep.subr.mxu1 %v3008_v29  ;;  %v2974_v33 = vpop.permute.xlu1 %2973 }
  0xf8   : > { %v2992_v34 = vsel %vm2987_vm8, %v2976_v32, %v2978_v26  ;;  %v2993_v35 = vsel %vm2987_vm8, %v2974_v33, %v2976_v32  ;;  %v6792_v26 = vld [vmem:[%s6932_s29 + $0x30] sm:$0xff] }
  0xf9   : > { %v3007_v36 = vmul.f32 %v6710_v30, %v2992_v34  ;;  %v3006_v37 = vmul.f32 %v6709_v31, %v2993_v35 }
  0xfb   : > { %v2972_v41 = vpop.permute.xlu0 %2971  ;;  %3048 = vmatprep.subr.mxu0 %v3006_v37  ;;  %3120 = vmatpush1.msra.mxu1 %v3007_v36  ;;  %v2986_v42 = vpop.permute.xlu1 %2985 }
  0xfc   : > { %v2994_v43 = vsel %vm2987_vm8, %v2972_v41, %v2974_v33  ;;  %v2995_v44 = vsel %vm2987_vm8, %v2986_v42, %v2972_v41  ;;  %6718 = vmatmul.mubr.msk.f32.vlgmr.msra.gmra.mxu1 %vm344_vm1, %v6716_v38 }
  0xfd   : > { %v3005_v45 = vmul.f32 %v6708_v39, %v2994_v43  ;;  %v3012_v46 = vmul.f32 %v6715_v40, %v2995_v44  ;;  %3295 = vmatprep.mubr.f32.mxu1 %v6867_v4 }
  0xff   : > { %v2984_v50 = vpop.permute.xlu0 %2983  ;;  %3049 = vmatpush1.msra.mxu0 %v3005_v45  ;;  %3261 = vmatprep.subr.mxu1 %v3012_v46  ;;  %v2982_v51 = vpop.permute.xlu1 %2981 }
 0x100   : > { %v2988_v52 = vsel %vm2987_vm8, %v2984_v50, %v2986_v42  ;;  %v2989_v53 = vsel %vm2987_vm8, %v2982_v51, %v2984_v50  ;;  %v2990_v54 = vsel %vm2987_vm8, %v2980_v27, %v2982_v51  ;;  %6717 = vmatmul.mubr.msk.f32.vlgmr.msra.gmra.mxu0 %vm344_vm1, %v6716_v38 }
 0x101   : > { %v3011_v55 = vmul.f32 %v6714_v47, %v2988_v52  ;;  %v3009_v5 = vmul.f32 %v6712_v48, %v2990_v54  ;;  %v3010_v56 = vmul.f32 %v6713_v49, %v2989_v53  ;;  %3224 = vmatprep.mubr.f32.mxu0 %v6867_v4 }
 0x103   : > { %3190 = vmatprep.subr.mxu0 %v3010_v56  ;;  %3262 = vmatpush1.msra.mxu1 %v3011_v55 }
 0x104   : > { %3191 = vmatpush1.msra.mxu0 %v3009_v5  ;;  %6720 = vmatmul.mubr.msk.f32.vlgmr.msra.gmra.mxu1 %vm344_vm1, %v6716_v38 }
 0x105   : > { %6719 = vmatmul.mubr.msk.f32.vlgmr.msra.gmra.mxu0 %vm344_vm1, %v6716_v38  ;;  %3351 = vmatprep.subr.mxu0 %v6938_v1 }
 0x106   : > { %3422 = vmatprep.subr.mxu1 %v6945_v2  ;;  %3456 = vmatprep.mubr.f32.mxu1 %v6867_v4 }
 0x107   : > { %3423 = vmatpush1.msra.mxu1 %v6935_v0  ;;  %3352 = vmatpush1.msra.mxu0 %v6948_v3 }
 0x108   : > { %3385 = vmatprep.mubr.f32.mxu0 %v6867_v4  ;;  %3493 = vmatprep.subr.mxu0 %v6967_v7 }
 0x109   : > { %3564 = vmatprep.subr.mxu1 %v6960_v6  ;;  %6721 = vmatmul.mubr.msk.f32.vlgmr.msra.gmra.mxu0 %vm344_vm1, %v291_v24 }
 0x10a   : > { %6722 = vmatmul.mubr.msk.f32.vlgmr.msra.gmra.mxu1 %vm344_vm1, %v291_v24  ;;  %3494 = vmatpush1.msra.mxu0 %v6793_v28 }
 0x10b   : > { %3565 = vmatpush1.msra.mxu1 %v6792_v26  ;;  %3598 = vmatprep.mubr.f32.mxu1 %v6867_v4 }
 0x10c   : > { %v7544_v3 = vpop.permute.xlu0 %282  ;;  %3527 = vmatprep.mubr.f32.mxu0 %v6867_v4 }
 0x10d   : > { %6723 = vmatmul.mubr.msk.f32.vlgmr.msra.gmra.mxu0 %vm344_vm1, %v291_v24 }
 0x10e   : > { %6724 = vmatmul.mubr.msk.f32.vlgmr.msra.gmra.mxu1 %vm344_vm1, %v291_v24  ;;  %3713 = vmatprep.mubr.f32.mxu0 %v6867_v4 }
 0x10f   : > { %3784 = vmatprep.mubr.f32.mxu1 %v6867_v4 }
 0x14e   : > { %v7534_v57 = vpop.f32.mrf.mxu1 }
 0x150   : > { %v7536_v8 = vpop.f32.mrf.mxu0  ;;  %v7538_v58 = vpop.f32.mrf.mxu1 }
 0x152   : > { %v7540_v1 = vpop.f32.mrf.mxu0 }
 0x154   : > { %v627_v2 = vpop.f32.mrf.mxu1 }
 0x155   : > { %v556_v59 = vpop.f32.mrf.mxu0  ;;  %v638_v6 = vadd.f32 %v627_v2, %v7544_v3 }
 0x156   : > { %v629_v60 = vpop.f32.mrf.mxu1  ;;  %v636_v9 = vadd.f32 %v556_v59, %v7544_v3 }
 0x157   : > { %v558_v0 = vpop.f32.mrf.mxu0  ;;  %v639_v11 = vadd.f32 %v629_v60, %v7544_v3 }
 0x158   : > { %v637_v13 = vadd.f32 %v558_v0, %v7544_v3 }
 0x15c   : > { %v7542_v61 = vpop.f32.mrf.mxu1 }
 0x15e   : > { %v7548_v7 = vpop.f32.mrf.mxu1 }
 0x160   : > { %v7546_v62 = vpop.f32.mrf.mxu0 }
 0x162   : > { %v7551_v63 = vpop.f32.mrf.mxu0 }
 0x164   : > { %v966_v12 = vpop.f32.mrf.mxu1 }
 0x165   : > { %v895_v14 = vpop.f32.mrf.mxu0  ;;  %v977_v15 = vadd.f32 %v966_v12, %v638_v6 }
 0x166   : > { %v968_v16 = vpop.f32.mrf.mxu1  ;;  %v975_v17 = vadd.f32 %v895_v14, %v636_v9 }
 0x167   : > { %v897_v18 = vpop.f32.mrf.mxu0  ;;  %v978_v19 = vadd.f32 %v968_v16, %v639_v11 }
 0x168   : > { %v976_v20 = vadd.f32 %v897_v18, %v637_v13 }
 0x16c   : > { %v7556_v21 = vpop.f32.mrf.mxu1 }
 0x16e   : > { %v7560_v23 = vpop.f32.mrf.mxu1 }
 0x170   : > { %v7558_v22 = vpop.f32.mrf.mxu0 }
 0x172   : > { %v7565_v25 = vpop.f32.mrf.mxu0 }
 0x174   : > { %v1305_v27 = vpop.f32.mrf.mxu1 }
 0x175   : > { %v1234_v29 = vpop.f32.mrf.mxu0  ;;  %v1316_v30 = vadd.f32 %v1305_v27, %v977_v15  ;;  %v632_v27 = vadd.f32 %v7536_v8, %v7544_v3  ;;  %v633_v8 = vadd.f32 %v7540_v1, %v7544_v3 }
 0x176   : > { %v1307_v31 = vpop.f32.mrf.mxu1  ;;  %v1314_v32 = vadd.f32 %v1234_v29, %v975_v17 }
 0x177   : > { %v1236_v33 = vpop.f32.mrf.mxu0  ;;  %v1317_v34 = vadd.f32 %v1307_v31, %v978_v19  ;;  %v634_v19 = vadd.f32 %v7534_v57, %v7544_v3  ;;  %v971_v31 = vadd.f32 %v7546_v62, %v632_v27  ;;  %v635_v62 = vadd.f32 %v7538_v58, %v7544_v3 }
 0x178   : > { %v1315_v35 = vadd.f32 %v1236_v33, %v976_v20 }
 0x179   : > { %v973_v26 = vadd.f32 %v7542_v61, %v634_v19 }
 0x17c   : > { %v1502_v36 = vpop.f32.mrf.mxu1 }
 0x17e   : > { %v7577_v38 = vpop.f32.mrf.mxu1 }
 0x180   : > { %v1431_v37 = vpop.f32.mrf.mxu0 }
 0x182   : > { %v7579_v39 = vpop.f32.mrf.mxu0 }
 0x184   : > { %v1644_v40 = vpop.f32.mrf.mxu1 }
 0x185   : > { %v1655_v41 = vadd.f32 %v1644_v40, %v1316_v30  ;;  %v1573_v42 = vpop.f32.mrf.mxu0  ;;  %v1312_v30 = vadd.f32 %v7556_v21, %v973_v26 }
 0x186   : > { %v1653_v43 = vadd.f32 %v1573_v42, %v1314_v32  ;;  %v1646_v44 = vpop.f32.mrf.mxu1 }
 0x187   : > { %v1656_v45 = vadd.f32 %v1646_v44, %v1317_v34  ;;  %v1575_v46 = vpop.f32.mrf.mxu0  ;;  %v1651_v34 = vadd.f32 %v1502_v36, %v1312_v30 }
 0x188   : > { %v1654_v47 = vadd.f32 %v1575_v46, %v1315_v35  ;;  %v1310_v35 = vadd.f32 %v7558_v22, %v971_v31 }
 0x189   : > { %v1799_v48 = vpop.f32.mrf.mxu1  ;;  %v1728_v49 = vpop.f32.mrf.mxu0 }
 0x18a   : > { %v1948_v42 = vadd.f32 %v1799_v48, %v1651_v34 }
 0x18b   : > { %v7581_v50 = vpop.f32.mrf.mxu1  ;;  %v7583_v51 = vpop.f32.mrf.mxu0 }
 0x18d   : > { %v1941_v52 = vpop.f32.mrf.mxu1 }
 0x18e   : > { %v7585_v53 = vadd.f32 %v1941_v52, %v1655_v41  ;;  %v1870_v54 = vpop.f32.mrf.mxu0  ;;  %v1649_v41 = vadd.f32 %v1431_v37, %v1310_v35  ;;  %v974_v37 = vadd.f32 %v7548_v7, %v635_v62  ;;  %v285_v62 = vld [vmem:[%s8488_s6] sm:$0xff] }
 0x18f   : > { %v7587_v55 = vadd.f32 %v1870_v54, %v1653_v43  ;;  %v1943_v5 = vpop.f32.mrf.mxu1 }
 0x190   : > { %v1953_v56 = vadd.f32 %v1943_v5, %v1656_v45  ;;  %v1872_v2 = vpop.f32.mrf.mxu0  ;;  %v972_v45 = vadd.f32 %v7551_v63, %v633_v8  ;;  %v1946_v46 = vadd.f32 %v1728_v49, %v1649_v41  ;;  %v1313_v58 = vadd.f32 %v7560_v23, %v974_v37 }
 0x191   : > { %v1951_v59 = vadd.f32 %v1872_v2, %v1654_v47  ;;  %v2138_v60 = vpop.f32.mrf.mxu1 }
 0x192   : > { %v2067_v0 = vpop.f32.mrf.mxu0  ;;  %v2287_v21 = vadd.f32 %v2138_v60, %v1948_v42  ;;  %v1311_v48 = vadd.f32 %v7565_v25, %v972_v45  ;;  %v1652_v7 = vadd.f32 %v7577_v38, %v1313_v58 }
 0x193   : > { %v2140_v6 = vpop.f32.mrf.mxu1  ;;  %v2285_v52 = vadd.f32 %v2067_v0, %v1946_v46 }
 0x194   : > { %v2069_v9 = vpop.f32.mrf.mxu0  ;;  %v1949_v23 = vadd.f32 %v7581_v50, %v1652_v7 }
 0x195   : > { %v7589_v11 = vpop.f32.mrf.mxu1 }
 0x196   : > { %v7591_v12 = vpop.f32.mrf.mxu0 }
 0x197   : > { %v2282_v13 = vpop.f32.mrf.mxu1  ;;  %v2289_v26 = vadd.f32 %v7591_v12, %v7587_v55 }
 0x198   : > { %v7593_v14 = vadd.f32 %v2282_v13, %v1953_v56  ;;  %v2211_v15 = vpop.f32.mrf.mxu0 }
 0x199   : > { %v7595_v16 = vadd.f32 %v2211_v15, %v1951_v59  ;;  %v1650_v59 = vadd.f32 %v7579_v39, %v1311_v48 }
 0x19b   : > { %v1947_v25 = vadd.f32 %v7583_v51, %v1650_v59  ;;  %v7819_v59 = vld [vmem:[%s8486_s4] sm:$0xff] }
 0x19c   : > { %v2477_v17 = vpop.f32.mrf.mxu1 }
 0x19d   : > { %v2626_v36 = vadd.f32 %v2477_v17, %v2287_v21  ;;  %v2286_v13 = vadd.f32 %v2069_v9, %v1947_v25  ;;  %v2288_v17 = vadd.f32 %v2140_v6, %v1949_v23 }
 0x19e   : > { %v2479_v20 = vpop.f32.mrf.mxu1 }
 0x19f   : > { %v2627_v38 = vadd.f32 %v2479_v20, %v2288_v17  ;;  %v2291_v20 = vadd.f32 %v7589_v11, %v7585_v53 }
 0x1a0   : > { %v2406_v18 = vpop.f32.mrf.mxu0 }
 0x1a1   : > { %v2624_v5 = vadd.f32 %v2406_v18, %v2285_v52  ;;  %v6794_v52 = vld [vmem:[%s8483_s1 + $0x8] sm:$0xff] }
 0x1a2   : > { %v2408_v24 = vpop.f32.mrf.mxu0 }
 0x1a3   : > { %v2625_v39 = vadd.f32 %v2408_v24, %v2286_v13 }
 0x1a4   : > { %v7602_v28 = vpop.f32.mrf.mxu1 }
 0x1a5   : > { %v7604_v29 = vpop.f32.mrf.mxu0  ;;  %v2630_v27 = vadd.f32 %v7602_v28, %v2291_v20 }
 0x1a6   : > { %v7608_v32 = vpop.f32.mrf.mxu1  ;;  %v2628_v30 = vadd.f32 %v7604_v29, %v2289_v26 }
 0x1a7   : > { %v7610_v33 = vpop.f32.mrf.mxu0  ;;  %v2631_v53 = vadd.f32 %v7608_v32, %v7593_v14 }
 0x1a8   : > { %v2629_v29 = vadd.f32 %v7610_v33, %v7595_v16 }
 0x1ac   : > { %v2816_v57 = vpop.f32.mrf.mxu1 }
 0x1ad   : > { %v2965_v54 = vadd.f32 %v2816_v57, %v2626_v36 }
 0x1ae   : > { %v2818_v40 = vpop.f32.mrf.mxu1 }
 0x1af   : > { %v2966_v19 = vadd.f32 %v2818_v40, %v2627_v38 }
 0x1b0   : > { %v2745_v61 = vpop.f32.mrf.mxu0 }
 0x1b1   : > { %v2963_v3 = vadd.f32 %v2745_v61, %v2624_v5 }
 0x1b2   : > { %v2747_v43 = vpop.f32.mrf.mxu0 }
 0x1b3   : > { %v2964_v18 = vadd.f32 %v2747_v43, %v2625_v39 }
 0x1b4   : > { %v7615_v44 = vpop.f32.mrf.mxu1 }
 0x1b5   : > { %v2887_v47 = vpop.f32.mrf.mxu0  ;;  %v2969_v34 = vadd.f32 %v7615_v44, %v2630_v27 }
 0x1b6   : > { %v7620_v22 = vpop.f32.mrf.mxu1  ;;  %v2967_v35 = vadd.f32 %v2887_v47, %v2628_v30 }
 0x1b7   : > { %v7624_v2 = vpop.f32.mrf.mxu0  ;;  %v2970_v28 = vadd.f32 %v7620_v22, %v2631_v53  ;;  %v6798_v53 = vld [vmem:[%s8483_s1 + $0x38] sm:$0xff] }
 0x1b8   : > { %v2968_v32 = vadd.f32 %v7624_v2, %v2629_v29  ;;  %v6795_v2 = vld [vmem:[%s8483_s1 + $0x18] sm:$0xff] }
 0x1bc   : > { %v3155_v1 = vpop.f32.mrf.mxu1 }
 0x1bd   : > { %v3304_v56 = vadd.f32 %v3155_v1, %v2965_v54 }
 0x1be   : > { %v3157_v9 = vpop.f32.mrf.mxu1 }
 0x1bf   : > { %v7627_v63 = vmax.f32 %v3304_v56, 0.0  ;;  %v3305_v50 = vadd.f32 %v3157_v9, %v2966_v19 }
 0x1c0   : > { %v3084_v49 = vpop.f32.mrf.mxu0 }
 0x1c1   : > { %v3302_v60 = vadd.f32 %v3084_v49, %v2963_v3  ;;  %3617 = vrot.lane.b32.xlu0 %v7627_v63, %s6866_s30  ;;  %v7655_v6 = vmax.f32 %v3305_v50, 0.0  ;;  %v6796_v3 = vld [vmem:[%s8483_s1 + $0x10] sm:$0xff] }
 0x1c2   : > { %v3086_v15 = vpop.f32.mrf.mxu0 }
 0x1c3   : > { %v7634_v0 = vmax.f32 %v3302_v60, 0.0  ;;  %v3303_v51 = vadd.f32 %v3086_v15, %v2964_v18 }
 0x1c4   : > { %v3297_v31 = vpop.f32.mrf.mxu1 }
 0x1c5   : > { %3941 = vrot.lane.b32.xlu0 %v7634_v0, %s6868_s8  ;;  %3613 = vrot.lane.b32.xlu1 %v7634_v0, %s6866_s30  ;;  %v7649_v24 = vmax.f32 %v3303_v51, 0.0  ;;  %v3226_v57 = vpop.f32.mrf.mxu0  ;;  %v3308_v55 = vadd.f32 %v3297_v31, %v2969_v34  ;;  %v6797_v34 = vld [vmem:[%s8483_s1] sm:$0xff] }
 0x1c6   : > { %v3306_v11 = vadd.f32 %v3226_v57, %v2967_v35  ;;  %v3299_v12 = vpop.f32.mrf.mxu1 }
 0x1c7   : > { %v7697_v61 = vmax.f32 %v3308_v55, 0.0  ;;  %v3309_v41 = vadd.f32 %v3299_v12, %v2970_v28  ;;  %v3228_v14 = vpop.f32.mrf.mxu0 }
 0x1c8   : > { %v7699_v40 = vmax.f32 %v3306_v11, 0.0  ;;  %v3307_v42 = vadd.f32 %v3228_v14, %v2968_v32 }
 0x1c9   : > { %3945 = vrot.lane.b32.xlu0 %v7627_v63, %s6868_s8  ;;  %5229 = vrot.lane.b32.xlu1 %v7627_v63, %s6871_s11  ;;  %v7706_v8 = vmax.f32 %v3309_v41, 0.0 }
 0x1ca   : > { %v7712_v16 = vmax.f32 %v3307_v42, 0.0  ;;  %v3458_v10 = vpop.f32.mrf.mxu1 }
 0x1cd   : > { %4270 = vrot.lane.b32.xlu0 %v7634_v0, %s6869_s9  ;;  %5558 = vrot.lane.b32.xlu1 %v7627_v63, %s6872_s12 }
 0x1d1   : > { %4274 = vrot.lane.b32.xlu0 %v7627_v63, %s6869_s9  ;;  %3615 = vrot.lane.b32.xlu1 %v7649_v24, %s6866_s30 }
 0x1d5   : > { %4599 = vrot.lane.b32.xlu0 %v7634_v0, %s6870_s10  ;;  %3619 = vrot.lane.b32.xlu1 %v7655_v6, %s6866_s30 }
 0x1d9   : > { %4603 = vrot.lane.b32.xlu0 %v7627_v63, %s6870_s10  ;;  %3943 = vrot.lane.b32.xlu1 %v7649_v24, %s6868_s8 }
 0x1dd   : > { %5225 = vrot.lane.b32.xlu0 %v7634_v0, %s6871_s11  ;;  %3947 = vrot.lane.b32.xlu1 %v7655_v6, %s6868_s8 }
 0x1e1   : > { %5227 = vrot.lane.b32.xlu0 %v7649_v24, %s6871_s11  ;;  %4272 = vrot.lane.b32.xlu1 %v7649_v24, %s6869_s9 }
 0x1e5   : > { %5231 = vrot.lane.b32.xlu0 %v7655_v6, %s6871_s11  ;;  %4276 = vrot.lane.b32.xlu1 %v7655_v6, %s6869_s9 }
 0x1e9   : > { %5556 = vrot.lane.b32.xlu0 %v7649_v24, %s6872_s12  ;;  %4601 = vrot.lane.b32.xlu1 %v7649_v24, %s6870_s10 }
 0x1ed   : > { %5560 = vrot.lane.b32.xlu0 %v7655_v6, %s6872_s12  ;;  %4605 = vrot.lane.b32.xlu1 %v7655_v6, %s6870_s10 }
 0x1f1   : > { %5237 = vrot.lane.b32.xlu0 %v7697_v61, %s6871_s11  ;;  %3621 = vrot.lane.b32.xlu1 %v7699_v40, %s6866_s30 }
 0x1f5   : > { %3627 = vrot.lane.b32.xlu0 %v7706_v8, %s6866_s30  ;;  %3625 = vrot.lane.b32.xlu1 %v7697_v61, %s6866_s30 }
 0x1f9   : > { %3949 = vrot.lane.b32.xlu1 %v7699_v40, %s6868_s8  ;;  %3623 = vrot.lane.b32.xlu0 %v7712_v16, %s6866_s30 }
 0x1fd   : > { %3953 = vrot.lane.b32.xlu1 %v7697_v61, %s6868_s8  ;;  %3955 = vrot.lane.b32.xlu0 %v7706_v8, %s6868_s8 }
 0x201   : > { %4278 = vrot.lane.b32.xlu1 %v7699_v40, %s6869_s9  ;;  %3951 = vrot.lane.b32.xlu0 %v7712_v16, %s6868_s8 }
 0x205   : > { %4282 = vrot.lane.b32.xlu1 %v7697_v61, %s6869_s9  ;;  %4284 = vrot.lane.b32.xlu0 %v7706_v8, %s6869_s9 }
 0x209   : > { %4607 = vrot.lane.b32.xlu1 %v7699_v40, %s6870_s10  ;;  %4280 = vrot.lane.b32.xlu0 %v7712_v16, %s6869_s9 }
 0x20d   : > { %4611 = vrot.lane.b32.xlu1 %v7697_v61, %s6870_s10  ;;  %4613 = vrot.lane.b32.xlu0 %v7706_v8, %s6870_s10 }
 0x211   : > { %5233 = vrot.lane.b32.xlu1 %v7699_v40, %s6871_s11  ;;  %4609 = vrot.lane.b32.xlu0 %v7712_v16, %s6870_s10 }
 0x215   : > { %5562 = vrot.lane.b32.xlu1 %v7699_v40, %s6872_s12  ;;  %5554 = vrot.lane.b32.xlu0 %v7634_v0, %s6872_s12 }
 0x219   : > { %5887 = vrot.lane.b32.xlu1 %v7627_v63, %s6873_s13  ;;  %5566 = vrot.lane.b32.xlu0 %v7697_v61, %s6872_s12 }
 0x21d   : > { %5891 = vrot.lane.b32.xlu1 %v7699_v40, %s6873_s13  ;;  %5885 = vrot.lane.b32.xlu0 %v7649_v24, %s6873_s13 }
 0x221   : > { %6216 = vrot.lane.b32.xlu1 %v7627_v63, %s6874_s14  ;;  %5889 = vrot.lane.b32.xlu0 %v7655_v6, %s6873_s13 }
 0x225   : > { %6220 = vrot.lane.b32.xlu1 %v7699_v40, %s6874_s14  ;;  %5883 = vrot.lane.b32.xlu0 %v7634_v0, %s6873_s13 }
 0x229   : > { %5235 = vrot.lane.b32.xlu1 %v7712_v16, %s6871_s11  ;;  %5895 = vrot.lane.b32.xlu0 %v7697_v61, %s6873_s13 }
 0x22d   : > { %5239 = vrot.lane.b32.xlu1 %v7706_v8, %s6871_s11  ;;  %6214 = vrot.lane.b32.xlu0 %v7649_v24, %s6874_s14 }
 0x231   : > { %5564 = vrot.lane.b32.xlu1 %v7712_v16, %s6872_s12  ;;  %6218 = vrot.lane.b32.xlu0 %v7655_v6, %s6874_s14 }
 0x233   : > { %v3618_v33 = vpop.permute.xlu0 %3617 }
 0x235   : > { %5568 = vrot.lane.b32.xlu1 %v7706_v8, %s6872_s12  ;;  %6212 = vrot.lane.b32.xlu0 %v7634_v0, %s6874_s14 }
 0x237   : > { %v7778_v43 = vpop.permute.xlu0 %3941  ;;  %v3614_v44 = vpop.permute.xlu1 %3613 }
 0x239   : > { %5893 = vrot.lane.b32.xlu1 %v7712_v16, %s6873_s13  ;;  %6224 = vrot.lane.b32.xlu0 %v7697_v61, %s6874_s14 }
 0x23b   : > { %v3946_v21 = vpop.permute.xlu0 %3945  ;;  %v7787_v45 = vpop.permute.xlu1 %5229 }
 0x23d   : > { %5897 = vrot.lane.b32.xlu1 %v7706_v8, %s6873_s13  ;;  %288 = vperm.xlu0 %6791, %v285_v62   ;;  %v6800_v62 = vld [vmem:[%s8483_s1 + $0x30] sm:$0xff] }
 0x23f   : > { %v7791_v46 = vpop.permute.xlu0 %4270  ;;  %v5559_v36 = vpop.permute.xlu1 %5558 }
 0x241   : > { %6222 = vrot.lane.b32.xlu1 %v7712_v16, %s6874_s14 }
 0x243   : > { %v7795_v47 = vpop.permute.xlu0 %4274  ;;  %v3616_v22 = vpop.permute.xlu1 %3615 }
 0x244   : > { %v3635_v37 = vsel %vm318_vm0, %v3614_v44, %v3616_v22  ;;  %v3634_v1 = vsel %vm318_vm0, %v3616_v22, %v3618_v33  ;;  %v6801_v22 = vld [vmem:[%s8483_s1 + $0x20] sm:$0xff] }
 0x245   : > { %v3638_v54 = vmul.f32 %v6794_v52, %v3635_v37  ;;  %6226 = vrot.lane.b32.xlu1 %v7706_v8, %s6874_s14  ;;  %v3639_v49 = vmul.f32 %v6796_v3, %v3634_v1 }
 0x247   : > { %v7806_v48 = vpop.permute.xlu0 %4599  ;;  %3679 = vmatprep.subr.mxu0 %v3638_v54  ;;  %v3620_v5 = vpop.permute.xlu1 %3619  ;;  %v6803_v54 = vld [vmem:[%s8483_s1 + $0x58] sm:$0xff] }
 0x248   : > { %v3633_v56 = vsel %vm318_vm0, %v3618_v33, %v3620_v5  ;;  %v6799_v33 = vld [vmem:[%s8483_s1 + $0x28] sm:$0xff] }
 0x249   : > { %v3640_v58 = vmul.f32 %v6795_v2, %v3633_v56  ;;  %v6804_v2 = vld [vmem:[%s8483_s1 + $0x50] sm:$0xff] }
 0x24b   : > { %v7821_v60 = vpop.permute.xlu0 %4603  ;;  %3750 = vmatprep.subr.mxu1 %v3640_v58  ;;  %v3944_v7 = vpop.permute.xlu1 %3943 }
 0x24c   : > { %3751 = vmatpush1.msra.mxu1 %v3639_v49  ;;  %v3963_v29 = vsel %vm656_vm2, %v7778_v43, %v3944_v7  ;;  %v3962_v42 = vsel %vm656_vm2, %v3944_v7, %v3946_v21  ;;  %v6805_v7 = vld [vmem:[%s8483_s1 + $0x40] sm:$0xff] }
 0x24d   : > { %6726 = vmatmul.mubr.msk.f32.vlgmr.msra.gmra.mxu1 %vm344_vm1, %v7819_v59  ;;  %v3967_v58 = vmul.f32 %v6804_v2, %v3962_v42 }
 0x24e   : > { %3926 = vmatprep.mubr.f32.mxu1 %v6867_v4 }
 0x24f   : > { %v7826_v25 = vpop.permute.xlu0 %5225  ;;  %v7828_v13 = vpop.permute.xlu1 %3947 }
 0x250   : > { %v3961_v41 = vsel %vm656_vm2, %v3946_v21, %v7828_v13  ;;  %v6802_v21 = vld [vmem:[%s8483_s1 + $0x48] sm:$0xff] }
 0x251   : > { %v3966_v52 = vmul.f32 %v6802_v21, %v3963_v29  ;;  %v3968_v1 = vmul.f32 %v6803_v54, %v3961_v41  ;;  %v6808_v29 = vld [vmem:[%s8483_s1 + $0x70] sm:$0xff]  ;;  %v6813_v21 = vld [vmem:[%s8483_s1 + $0x80] sm:$0xff]  ;;  %v6814_v54 = vld [vmem:[%s8483_s1 + $0xb8] sm:$0xff] }
 0x253   : > { %v7830_v23 = vpop.permute.xlu0 %5227  ;;  %v7832_v39 = vpop.permute.xlu1 %4272 }
 0x257   : > { %v7834_v15 = vpop.permute.xlu0 %5231  ;;  %v7836_v17 = vpop.permute.xlu1 %4276 }
 0x25b   : > { %v7838_v18 = vpop.permute.xlu0 %5556  ;;  %v7840_v38 = vpop.permute.xlu1 %4601 }
 0x25c   : > { %v7845_v51 = vsel %vm2309_vm6, %v7838_v18, %v5559_v36 }
 0x25f   : > { %v7847_v9 = vpop.permute.xlu0 %5560  ;;  %v7849_v19 = vpop.permute.xlu1 %4605 }
 0x260   : > { %v7854_v50 = vsel %vm2309_vm6, %v5559_v36, %v7847_v9 }
 0x263   : > { %v7856_v20 = vpop.permute.xlu0 %5237  ;;  %v3622_v26 = vpop.permute.xlu1 %3621 }
 0x264   : > { %v3632_v11 = vsel %vm318_vm0, %v3620_v5, %v3622_v26 }
 0x265   : > { %v3641_v37 = vmul.f32 %v6801_v22, %v3632_v11  ;;  %v6807_v11 = vld [vmem:[%s8483_s1 + $0x68] sm:$0xff] }
 0x267   : > { %v3628_v27 = vpop.permute.xlu0 %3627  ;;  %v3626_v30 = vpop.permute.xlu1 %3625 }
 0x268   : > { %v3636_v31 = vsel %vm318_vm0, %v3628_v27, %v3614_v44  ;;  %v3629_v57 = vsel %vm318_vm0, %v3626_v30, %v3628_v27  ;;  %v6806_v27 = vld [vmem:[%s8483_s1 + $0x78] sm:$0xff] }
 0x269   : > { %v3637_v35 = vmul.f32 %v6797_v34, %v3636_v31  ;;  %v3644_v55 = vmul.f32 %v6798_v53, %v3629_v57  ;;  %v4290_v31 = vsel %vm995_vm3, %v7795_v47, %v7836_v17 }
 0x26b   : > { %v3624_v12 = vpop.permute.xlu0 %3623  ;;  %3680 = vmatpush1.msra.mxu0 %v3637_v35  ;;  %3892 = vmatprep.subr.mxu1 %v3644_v55  ;;  %v3950_v28 = vpop.permute.xlu1 %3949  ;;  %v4292_v35 = vsel %vm995_vm3, %v7791_v46, %v7832_v39 }
 0x26c   : > { %v3630_v14 = vsel %vm318_vm0, %v3624_v12, %v3626_v30  ;;  %v3631_v32 = vsel %vm318_vm0, %v3622_v26, %v3624_v12  ;;  %6725 = vmatmul.mubr.msk.f32.vlgmr.msra.gmra.mxu0 %vm344_vm1, %v7819_v59  ;;  %v3960_v57 = vsel %vm656_vm2, %v7828_v13, %v3950_v28  ;;  %v4291_v13 = vsel %vm995_vm3, %v7832_v39, %v7795_v47  ;;  %v6810_v47 = vld [vmem:[%s8483_s1 + $0x60] sm:$0xff] }
 0x26d   : > { %v3642_v44 = vmul.f32 %v6799_v33, %v3631_v32  ;;  %v3643_v36 = vmul.f32 %v6800_v62, %v3630_v14  ;;  %3855 = vmatprep.mubr.f32.mxu0 %v6867_v4  ;;  %v3969_v39 = vmul.f32 %v6810_v47, %v3960_v57  ;;  %v6811_v32 = vld [vmem:[%s8483_s1 + $0x88] sm:$0xff]  ;;  %v6812_v62 = vld [vmem:[%s8483_s1 + $0x90] sm:$0xff] }
 0x26e   : > { %v4295_v42 = vmul.f32 %v6811_v32, %v4292_v35 }
 0x26f   : > { %v3956_v5 = vpop.permute.xlu0 %3955  ;;  %3821 = vmatprep.subr.mxu0 %v3642_v44  ;;  %3893 = vmatpush1.msra.mxu1 %v3643_v36  ;;  %v3954_v56 = vpop.permute.xlu1 %3953  ;;  %v4296_v36 = vmul.f32 %v6812_v62, %v4291_v13  ;;  %v6824_v62 = vld [vmem:[%s8483_s1 + $0xf0] sm:$0xff] }
 0x270   : > { %v3964_v3 = vsel %vm656_vm2, %v3956_v5, %v7778_v43  ;;  %v3957_v49 = vsel %vm656_vm2, %v3954_v56, %v3956_v5  ;;  %3822 = vmatpush1.msra.mxu0 %v3641_v37  ;;  %6728 = vmatmul.mubr.msk.f32.vlgmr.msra.gmra.mxu1 %vm344_vm1, %v7819_v59  ;;  %v6729_v43 = vld [vmem:[%s8486_s4 + $0x8] sm:$0xff]  ;;  %v4619_v5 = vsel %vm1334_vm4, %v7821_v60, %v7849_v19 }
 0x271   : > { %v3965_v26 = vmul.f32 %v6805_v7, %v3964_v3  ;;  %v3972_v30 = vmul.f32 %v6806_v27, %v3957_v49  ;;  %4079 = vmatprep.subr.mxu1 %v3968_v1  ;;  %6727 = vmatmul.mubr.msk.f32.vlgmr.msra.gmra.mxu0 %vm344_vm1, %v7819_v59  ;;  %v4621_v3 = vsel %vm1334_vm4, %v7806_v48, %v7840_v38 }
 0x272   : > { %4008 = vmatprep.subr.mxu0 %v3966_v52  ;;  %4080 = vmatpush1.msra.mxu1 %v3967_v58 }
 0x273   : > { %v3952_v34 = vpop.permute.xlu0 %3951  ;;  %4009 = vmatpush1.msra.mxu0 %v3965_v26  ;;  %4113 = vmatprep.mubr.f32.mxu1 %v6867_v4  ;;  %v4279_v59 = vpop.permute.xlu1 %4278  ;;  %v6815_v26 = vld [vmem:[%s8483_s1 + $0xa8] sm:$0xff] }
 0x274   : > { %v3958_v53 = vsel %vm656_vm2, %v3952_v34, %v3954_v56  ;;  %v3959_v55 = vsel %vm656_vm2, %v3950_v28, %v3952_v34  ;;  %4221 = vmatprep.subr.mxu1 %v3972_v30  ;;  %4042 = vmatprep.mubr.f32.mxu0 %v6867_v4  ;;  %v6809_v28 = vld [vmem:[%s8483_s1 + $0x98] sm:$0xff]  ;;  %v4289_v56 = vsel %vm995_vm3, %v7836_v17, %v4279_v59  ;;  %v6816_v30 = vld [vmem:[%s8483_s1 + $0xb0] sm:$0xff]  ;;  %v6819_v34 = vld [vmem:[%s8483_s1 + $0xc8] sm:$0xff] }
 0x275   : > { %v3970_v12 = vmul.f32 %v6807_v11, %v3959_v55  ;;  %v3971_v41 = vmul.f32 %v6808_v29, %v3958_v53  ;;  %6731 = vmatmul.mubr.msk.f32.vlgmr.msra.gmra.mxu1 %vm344_vm1, %v6729_v43  ;;  %6730 = vmatmul.mubr.msk.f32.vlgmr.msra.gmra.mxu0 %vm344_vm1, %v6729_v43  ;;  %v4297_v14 = vmul.f32 %v6809_v28, %v4290_v31  ;;  %v6817_v31 = vld [vmem:[%s8483_s1 + $0xd8] sm:$0xff]  ;;  %v6820_v55 = vld [vmem:[%s8483_s1 + $0xd0] sm:$0xff]  ;;  %v6821_v29 = vld [vmem:[%s8483_s1 + $0xc0] sm:$0xff] }
 0x276   : > { %4255 = vmatprep.mubr.f32.mxu1 %v6867_v4  ;;  %4184 = vmatprep.mubr.f32.mxu0 %v6867_v4  ;;  %v4620_v17 = vsel %vm1334_vm4, %v7840_v38, %v7821_v60  ;;  %v4626_v57 = vmul.f32 %v6817_v31, %v4619_v5  ;;  %v6818_v60 = vld [vmem:[%s8483_s1 + $0xa0] sm:$0xff]  ;;  %v6822_v28 = vld [vmem:[%s8483_s1 + $0xf8] sm:$0xff] }
 0x277   : > { %v4285_v33 = vpop.permute.xlu0 %4284  ;;  %4150 = vmatprep.subr.mxu0 %v3970_v12  ;;  %4222 = vmatpush1.msra.mxu1 %v3971_v41  ;;  %v4283_v44 = vpop.permute.xlu1 %4282  ;;  %v4298_v38 = vmul.f32 %v6818_v60, %v4289_v56  ;;  %v4625_v13 = vmul.f32 %v6820_v55, %v4620_v17  ;;  %v6833_v55 = vld [vmem:[%s8483_s1 + $0x180] sm:$0xff] }
 0x278   : > { %v4293_v22 = vsel %vm995_vm3, %v4285_v33, %v7791_v46  ;;  %v4286_v37 = vsel %vm995_vm3, %v4283_v44, %v4285_v33  ;;  %4151 = vmatpush1.msra.mxu0 %v3969_v39  ;;  %4408 = vmatprep.subr.mxu1 %v4297_v14  ;;  %v6734_v46 = vld [vmem:[%s8486_s4 + $0x10] sm:$0xff] }
 0x279   : > { %v4294_v52 = vmul.f32 %v6813_v21, %v4293_v22  ;;  %v4301_v1 = vmul.f32 %v6814_v54, %v4286_v37  ;;  %6733 = vmatmul.mubr.msk.f32.vlgmr.msra.gmra.mxu1 %vm344_vm1, %v6729_v43  ;;  %6732 = vmatmul.mubr.msk.f32.vlgmr.msra.gmra.mxu0 %vm344_vm1, %v6729_v43  ;;  %v6825_v22 = vld [vmem:[%s8483_s1 + $0xe0] sm:$0xff] }
 0x27a   : > { %4337 = vmatprep.subr.mxu0 %v4295_v42  ;;  %4409 = vmatpush1.msra.mxu1 %v4296_v36 }
 0x27b   : > { %v4281_v2 = vpop.permute.xlu0 %4280  ;;  %4338 = vmatpush1.msra.mxu0 %v4294_v52  ;;  %4442 = vmatprep.mubr.f32.mxu1 %v6867_v4  ;;  %v4608_v58 = vpop.permute.xlu1 %4607 }
 0x27c   : > { %v4287_v49 = vsel %vm995_vm3, %v4281_v2, %v4283_v44  ;;  %v4288_v7 = vsel %vm995_vm3, %v4279_v59, %v4281_v2  ;;  %4550 = vmatprep.subr.mxu1 %v4301_v1  ;;  %4371 = vmatprep.mubr.f32.mxu0 %v6867_v4  ;;  %v4624_v59 = vmul.f32 %v6819_v34, %v4621_v3  ;;  %v6823_v44 = vld [vmem:[%s8483_s1 + $0xe8] sm:$0xff]  ;;  %v6744_v1 = vld [vmem:[%s8486_s4 + $0x20] sm:$0xff] }
 0x27d   : > { %v4299_v27 = vmul.f32 %v6815_v26, %v4288_v7  ;;  %v4300_v43 = vmul.f32 %v6816_v30, %v4287_v49  ;;  %6736 = vmatmul.mubr.msk.f32.vlgmr.msra.gmra.mxu1 %vm344_vm1, %v6734_v46  ;;  %6735 = vmatmul.mubr.msk.f32.vlgmr.msra.gmra.mxu0 %vm344_vm1, %v6734_v46  ;;  %v4618_v47 = vsel %vm1334_vm4, %v7849_v19, %v4608_v58 }
 0x27e   : > { %4584 = vmatprep.mubr.f32.mxu1 %v6867_v4  ;;  %4513 = vmatprep.mubr.f32.mxu0 %v6867_v4  ;;  %v4627_v37 = vmul.f32 %v6825_v22, %v4618_v47 }
 0x27f   : > { %v4614_v35 = vpop.permute.xlu0 %4613  ;;  %4479 = vmatprep.subr.mxu0 %v4299_v27  ;;  %4551 = vmatpush1.msra.mxu1 %v4300_v43  ;;  %v4612_v53 = vpop.permute.xlu1 %4611 }
 0x280   : > { %v4622_v11 = vsel %vm1334_vm4, %v4614_v35, %v7806_v48  ;;  %v4615_v12 = vsel %vm1334_vm4, %v4612_v53, %v4614_v35  ;;  %4480 = vmatpush1.msra.mxu0 %v4298_v38  ;;  %4737 = vmatprep.subr.mxu1 %v4626_v57  ;;  %v6739_v48 = vld [vmem:[%s8486_s4 + $0x18] sm:$0xff]  ;;  %v6830_v57 = vld [vmem:[%s8483_s1 + $0x160] sm:$0xff]  ;;  %v6831_v38 = vld [vmem:[%s8483_s1 + $0x168] sm:$0xff] }
 0x281   : > { %v4623_v41 = vmul.f32 %v6821_v29, %v4622_v11  ;;  %v4630_v14 = vmul.f32 %v6822_v28, %v4615_v12  ;;  %6738 = vmatmul.mubr.msk.f32.vlgmr.msra.gmra.mxu1 %vm344_vm1, %v6734_v46  ;;  %6737 = vmatmul.mubr.msk.f32.vlgmr.msra.gmra.mxu0 %vm344_vm1, %v6734_v46  ;;  %v6834_v29 = vld [vmem:[%s8483_s1 + $0x170] sm:$0xff]  ;;  %v6835_v28 = vld [vmem:[%s8483_s1 + $0x178] sm:$0xff] }
 0x282   : > { %4666 = vmatprep.subr.mxu0 %v4624_v59  ;;  %4738 = vmatpush1.msra.mxu1 %v4625_v13  ;;  %v6832_v59 = vld [vmem:[%s8483_s1 + $0x188] sm:$0xff] }
 0x283   : > { %v4610_v39 = vpop.permute.xlu0 %4609  ;;  %4667 = vmatpush1.msra.mxu0 %v4623_v41  ;;  %4771 = vmatprep.mubr.f32.mxu1 %v6867_v4  ;;  %v8043_v32 = vpop.permute.xlu1 %5233  ;;  %v5579_v35 = vmul.f32 %v6832_v59, %v7845_v51 }
 0x284   : > { %v4616_v42 = vsel %vm1334_vm4, %v4610_v39, %v4612_v53  ;;  %v4617_v33 = vsel %vm1334_vm4, %v4608_v58, %v4610_v39  ;;  %4879 = vmatprep.subr.mxu1 %v4630_v14  ;;  %4700 = vmatprep.mubr.f32.mxu0 %v6867_v4  ;;  %v5244_v54 = vsel %vm1970_vm5, %v7834_v15, %v8043_v32  ;;  %v6836_v14 = vld [vmem:[%s8483_s1 + $0x198] sm:$0xff] }
 0x285   : > { %v4628_v19 = vmul.f32 %v6823_v44, %v4617_v33  ;;  %v4629_v36 = vmul.f32 %v6824_v62, %v4616_v42  ;;  %6741 = vmatmul.mubr.msk.f32.vlgmr.msra.gmra.mxu1 %vm344_vm1, %v6739_v48  ;;  %6740 = vmatmul.mubr.msk.f32.vlgmr.msra.gmra.mxu0 %vm344_vm1, %v6739_v48  ;;  %v6837_v42 = vld [vmem:[%s8483_s1 + $0x190] sm:$0xff] }
 0x286   : > { %4913 = vmatprep.mubr.f32.mxu1 %v6867_v4  ;;  %4842 = vmatprep.mubr.f32.mxu0 %v6867_v4  ;;  %v5580_v33 = vmul.f32 %v6837_v42, %v7854_v50  ;;  %v6840_v50 = vld [vmem:[%s8483_s1 + $0x1c8] sm:$0xff] }
 0x287   : > { %v8063_v21 = vpop.permute.xlu0 %5554  ;;  %4808 = vmatprep.subr.mxu0 %v4628_v19  ;;  %4880 = vmatpush1.msra.mxu1 %v4629_v36  ;;  %v8065_v52 = vpop.permute.xlu1 %5562  ;;  %v6838_v19 = vld [vmem:[%s8483_s1 + $0x1a0] sm:$0xff]  ;;  %v6839_v36 = vld [vmem:[%s8483_s1 + $0x1a8] sm:$0xff] }
 0x288   : > { %4809 = vmatpush1.msra.mxu0 %v4627_v37  ;;  %5034 = vmatprep.subr.mxu1 %v7655_v6  ;;  %v5246_v6 = vsel %vm1970_vm5, %v7830_v23, %v7787_v45  ;;  %v5576_v31 = vsel %vm2309_vm6, %v8063_v21, %v7838_v18  ;;  %v5573_v51 = vsel %vm2309_vm6, %v7847_v9, %v8065_v52  ;;  %v6754_v9 = vld [vmem:[%s8486_s4 + $0x30] sm:$0xff] }
 0x289   : > { %6743 = vmatmul.mubr.msk.f32.vlgmr.msra.gmra.mxu1 %vm344_vm1, %v6739_v48  ;;  %6742 = vmatmul.mubr.msk.f32.vlgmr.msra.gmra.mxu0 %vm344_vm1, %v6739_v48  ;;  %v5578_v13 = vmul.f32 %v6833_v55, %v5576_v31  ;;  %v5581_v48 = vmul.f32 %v6836_v14, %v5573_v51  ;;  %v6849_v55 = vld [vmem:[%s8483_s1 + $0x200] sm:$0xff]  ;;  %v6853_v14 = vld [vmem:[%s8483_s1 + $0x210] sm:$0xff] }
 0x28a   : > { %4963 = vmatprep.subr.mxu0 %v7649_v24  ;;  %5035 = vmatpush1.msra.mxu1 %v7627_v63  ;;  %v5245_v63 = vsel %vm1970_vm5, %v7787_v45, %v7834_v15  ;;  %v6826_v24 = vld [vmem:[%s8483_s1 + $0x158] sm:$0xff] }
 0x28b   : > { %4964 = vmatpush1.msra.mxu0 %v7634_v0  ;;  %5176 = vmatprep.subr.mxu1 %v7706_v8  ;;  %v8085_v46 = vpop.permute.xlu0 %5566  ;;  %v8087_v5 = vpop.permute.xlu1 %5887  ;;  %v5252_v0 = vmul.f32 %v6826_v24, %v5244_v54  ;;  %v5247_v8 = vsel %vm1970_vm5, %v7826_v25, %v7830_v23  ;;  %v6828_v23 = vld [vmem:[%s8483_s1 + $0x150] sm:$0xff]  ;;  %v6841_v24 = vld [vmem:[%s8483_s1 + $0x1c0] sm:$0xff] }
 0x28c   : > { %5068 = vmatprep.mubr.f32.mxu1 %v6867_v4  ;;  %5105 = vmatprep.subr.mxu0 %v7712_v16  ;;  %v6827_v16 = vld [vmem:[%s8483_s1 + $0x148] sm:$0xff]  ;;  %v5251_v2 = vmul.f32 %v6828_v23, %v5245_v63 }
 0x28d   : > { %4997 = vmatprep.mubr.f32.mxu0 %v6867_v4  ;;  %6746 = vmatmul.mubr.msk.f32.vlgmr.msra.gmra.mxu1 %vm344_vm1, %v6744_v1  ;;  %v5250_v56 = vmul.f32 %v6827_v16, %v5246_v6 }
 0x28e   : > { %5177 = vmatpush1.msra.mxu1 %v7697_v61  ;;  %6745 = vmatmul.mubr.msk.f32.vlgmr.msra.gmra.mxu0 %vm344_vm1, %v6744_v1  ;;  %v6829_v61 = vld [vmem:[%s8483_s1 + $0x140] sm:$0xff] }
 0x28f   : > { %5106 = vmatpush1.msra.mxu0 %v7699_v40  ;;  %5363 = vmatprep.subr.mxu1 %v5252_v0  ;;  %v8110_v45 = vpop.permute.xlu0 %5885  ;;  %v8112_v15 = vpop.permute.xlu1 %5891  ;;  %v5249_v58 = vmul.f32 %v6829_v61, %v5247_v8  ;;  %v6749_v40 = vld [vmem:[%s8486_s4 + $0x28] sm:$0xff]  ;;  %v6842_v8 = vld [vmem:[%s8483_s1 + $0x1b0] sm:$0xff] }
 0x290   : > { %5292 = vmatprep.subr.mxu0 %v5250_v56  ;;  %5210 = vmatprep.mubr.f32.mxu1 %v6867_v4  ;;  %v5904_v47 = vsel %vm2648_vm7, %v8110_v45, %v8087_v5 }
 0x291   : > { %5139 = vmatprep.mubr.f32.mxu0 %v6867_v4  ;;  %6748 = vmatmul.mubr.msk.f32.vlgmr.msra.gmra.mxu1 %vm344_vm1, %v6744_v1 }
 0x292   : > { %5364 = vmatpush1.msra.mxu1 %v5251_v2  ;;  %6747 = vmatmul.mubr.msk.f32.vlgmr.msra.gmra.mxu0 %vm344_vm1, %v6744_v1 }
 0x293   : > { %5293 = vmatpush1.msra.mxu0 %v5249_v58  ;;  %v8127_v3 = vpop.permute.xlu0 %5889  ;;  %5397 = vmatprep.mubr.f32.mxu1 %v6867_v4  ;;  %v8130_v49 = vpop.permute.xlu1 %6216  ;;  %v6759_v58 = vld [vmem:[%s8486_s4 + $0x38] sm:$0xff] }
 0x294   : > { %5326 = vmatprep.mubr.f32.mxu0 %v6867_v4  ;;  %v5902_v1 = vsel %vm2648_vm7, %v8127_v3, %v8112_v15 }
 0x295   : > { %6751 = vmatmul.mubr.msk.f32.vlgmr.msra.gmra.mxu1 %vm344_vm1, %v6749_v40 }
 0x296   : > { %6750 = vmatmul.mubr.msk.f32.vlgmr.msra.gmra.mxu0 %vm344_vm1, %v6749_v40  ;;  %5539 = vmatprep.mubr.f32.mxu1 %v6867_v4 }
 0x297   : > { %v8136_v7 = vpop.permute.xlu0 %5883  ;;  %v8138_v17 = vpop.permute.xlu1 %6220  ;;  %5468 = vmatprep.mubr.f32.mxu0 %v6867_v4 }
 0x298   : > { %v5905_v37 = vsel %vm2648_vm7, %v8136_v7, %v8110_v45  ;;  %v6844_v45 = vld [vmem:[%s8483_s1 + $0x1d8] sm:$0xff] }
 0x299   : > { %v5907_v0 = vmul.f32 %v6841_v24, %v5905_v37  ;;  %v5910_v23 = vmul.f32 %v6844_v45, %v5902_v1  ;;  %v3387_v37 = vpop.f32.mrf.mxu0 }
 0x29b   : > { %v8141_v26 = vpop.permute.xlu0 %5895  ;;  %v5236_v27 = vpop.permute.xlu1 %5235 }
 0x29c   : > { %v5242_v30 = vsel %vm1970_vm5, %v5236_v27, %v7856_v20  ;;  %v5243_v43 = vsel %vm1970_vm5, %v8043_v32, %v5236_v27  ;;  %v6845_v27 = vld [vmem:[%s8483_s1 + $0x1d0] sm:$0xff] }
 0x29d   : > { %v5253_v60 = vmul.f32 %v6830_v57, %v5243_v43  ;;  %v5254_v34 = vmul.f32 %v6831_v38, %v5242_v30  ;;  %v6846_v43 = vld [vmem:[%s8483_s1 + $0x1e0] sm:$0xff]  ;;  %v6847_v57 = vld [vmem:[%s8483_s1 + $0x1e8] sm:$0xff] }
 0x29e   : > { %v6848_v38 = vld [vmem:[%s8483_s1 + $0x208] sm:$0xff] }
 0x29f   : > { %v8163_v53 = vpop.permute.xlu0 %6214  ;;  %5434 = vmatprep.subr.mxu0 %v5254_v34  ;;  %v5240_v18 = vpop.permute.xlu1 %5239 }
 0x2a0   : > { %v5241_v11 = vsel %vm1970_vm5, %v7856_v20, %v5240_v18  ;;  %v5248_v12 = vsel %vm1970_vm5, %v5240_v18, %v7826_v25  ;;  %5435 = vmatpush1.msra.mxu0 %v5253_v60 }
 0x2a1   : > { %v5255_v41 = vmul.f32 %v6834_v29, %v5241_v11  ;;  %v5256_v20 = vmul.f32 %v6835_v28, %v5248_v12  ;;  %6752 = vmatmul.mubr.msk.f32.vlgmr.msra.gmra.mxu0 %vm344_vm1, %v6749_v40  ;;  %5621 = vmatprep.subr.mxu0 %v5579_v35  ;;  %v6850_v11 = vld [vmem:[%s8483_s1 + $0x1f0] sm:$0xff]  ;;  %v6764_v28 = vld [vmem:[%s8486_s4 + $0x40] sm:$0xff] }
 0x2a2   : > { %5622 = vmatpush1.msra.mxu0 %v5578_v13  ;;  %5655 = vmatprep.mubr.f32.mxu0 %v6867_v4 }
 0x2a3   : > { %5505 = vmatprep.subr.mxu1 %v5256_v20  ;;  %v5565_v25 = vpop.permute.xlu1 %5564  ;;  %v8206_v44 = vpop.permute.xlu0 %6218  ;;  %v6852_v20 = vld [vmem:[%s8483_s1 + $0x218] sm:$0xff] }
 0x2a4   : > { %v5571_v39 = vsel %vm2309_vm6, %v5565_v25, %v8085_v46  ;;  %v5572_v32 = vsel %vm2309_vm6, %v8065_v52, %v5565_v25  ;;  %5506 = vmatpush1.msra.mxu1 %v5255_v41  ;;  %v5908_v52 = vmul.f32 %v6840_v50, %v5904_v47  ;;  %v6231_v35 = vsel %vm2987_vm8, %v8206_v44, %v8138_v17  ;;  %v6854_v47 = vld [vmem:[%s8483_s1 + $0x220] sm:$0xff]  ;;  %v8356_v50 = vpop.f32.mrf.mxu1 }
 0x2a5   : > { %v5582_v62 = vmul.f32 %v6838_v19, %v5572_v32  ;;  %v5583_v22 = vmul.f32 %v6839_v36, %v5571_v39  ;;  %6753 = vmatmul.mubr.msk.f32.vlgmr.msra.gmra.mxu1 %vm344_vm1, %v6749_v40  ;;  %6755 = vmatmul.mubr.msk.f32.vlgmr.msra.gmra.mxu0 %vm344_vm1, %v6754_v9  ;;  %v6239_v25 = vmul.f32 %v6852_v20, %v6231_v35  ;;  %v6855_v32 = vld [vmem:[%s8483_s1 + $0x228] sm:$0xff]  ;;  %v6856_v19 = vld [vmem:[%s8483_s1 + $0x230] sm:$0xff]  ;;  %v6857_v36 = vld [vmem:[%s8483_s1 + $0x238] sm:$0xff] }
 0x2a6   : > { %5692 = vmatprep.subr.mxu1 %v5581_v48  ;;  %5726 = vmatprep.mubr.f32.mxu1 %v6867_v4 }
 0x2a7   : > { %5693 = vmatpush1.msra.mxu1 %v5580_v33  ;;  %5763 = vmatprep.subr.mxu0 %v5583_v22  ;;  %v5569_v54 = vpop.permute.xlu1 %5568  ;;  %v8253_v2 = vpop.permute.xlu0 %6212 }
 0x2a8   : > { %v5570_v6 = vsel %vm2309_vm6, %v8085_v46, %v5569_v54  ;;  %v5577_v63 = vsel %vm2309_vm6, %v5569_v54, %v8063_v21  ;;  %5764 = vmatpush1.msra.mxu0 %v5582_v62  ;;  %v6843_v46 = vld [vmem:[%s8483_s1 + $0x1b8] sm:$0xff]  ;;  %5797 = vmatprep.mubr.f32.mxu0 %v6867_v4  ;;  %v5903_v21 = vsel %vm2648_vm7, %v8087_v5, %v8127_v3  ;;  %v8358_v54 = vpop.f32.mrf.mxu1 }
 0x2a9   : > { %v5584_v16 = vmul.f32 %v6842_v8, %v5570_v6  ;;  %v5585_v56 = vmul.f32 %v6843_v46, %v5577_v63  ;;  %6756 = vmatmul.mubr.msk.f32.vlgmr.msra.gmra.mxu1 %vm344_vm1, %v6754_v9  ;;  %6757 = vmatmul.mubr.msk.f32.vlgmr.msra.gmra.mxu0 %vm344_vm1, %v6754_v9  ;;  %v6233_v5 = vsel %vm2987_vm8, %v8163_v53, %v8130_v49 }
 0x2aa   : > { %5950 = vmatprep.subr.mxu0 %v5908_v52  ;;  %5868 = vmatprep.mubr.f32.mxu1 %v6867_v4  ;;  %v5909_v30 = vmul.f32 %v6845_v27, %v5903_v21  ;;  %v6237_v34 = vmul.f32 %v6848_v38, %v6233_v5  ;;  %v3389_v52 = vpop.f32.mrf.mxu0  ;;  %v8360_v6 = vpop.f32.mrf.mxu1 }
 0x2ab   : > { %5951 = vmatpush1.msra.mxu0 %v5907_v0  ;;  %5834 = vmatprep.subr.mxu1 %v5585_v56  ;;  %v5894_v61 = vpop.permute.xlu1 %5893  ;;  %v6225_v29 = vpop.permute.xlu0 %6224 }
 0x2ac   : > { %v5900_v40 = vsel %vm2648_vm7, %v5894_v61, %v8141_v26  ;;  %v5901_v3 = vsel %vm2648_vm7, %v8112_v15, %v5894_v61  ;;  %5835 = vmatpush1.msra.mxu1 %v5584_v16  ;;  %5984 = vmatprep.mubr.f32.mxu0 %v6867_v4  ;;  %v6234_v15 = vsel %vm2987_vm8, %v8253_v2, %v8163_v53  ;;  %v3529_v1 = vpop.f32.mrf.mxu0 }
 0x2ad   : > { %v5911_v31 = vmul.f32 %v6846_v43, %v5901_v3  ;;  %v5912_v60 = vmul.f32 %v6847_v57, %v5900_v40  ;;  %6758 = vmatmul.mubr.msk.f32.vlgmr.msra.gmra.mxu1 %vm344_vm1, %v6754_v9  ;;  %6760 = vmatmul.mubr.msk.f32.vlgmr.msra.gmra.mxu0 %vm344_vm1, %v6759_v58  ;;  %v6236_v13 = vmul.f32 %v6849_v55, %v6234_v15 }
 0x2ae   : > { %6021 = vmatprep.subr.mxu1 %v5910_v23  ;;  %6055 = vmatprep.mubr.f32.mxu1 %v6867_v4  ;;  %v8362_v63 = vpop.f32.mrf.mxu0 }
 0x2af   : > { %6022 = vmatpush1.msra.mxu1 %v5909_v30  ;;  %6092 = vmatprep.subr.mxu0 %v5912_v60  ;;  %v5898_v59 = vpop.permute.xlu1 %5897 }
 0x2b0   : > { %v5899_v53 = vsel %vm2648_vm7, %v8141_v26, %v5898_v59  ;;  %v5906_v18 = vsel %vm2648_vm7, %v5898_v59, %v8136_v7  ;;  %6093 = vmatpush1.msra.mxu0 %v5911_v31  ;;  %v6851_v26 = vld [vmem:[%s8483_s1 + $0x1f8] sm:$0xff]  ;;  %6126 = vmatprep.mubr.f32.mxu0 %v6867_v4  ;;  %v6232_v7 = vsel %vm2987_vm8, %v8130_v49, %v8206_v44 }
 0x2b1   : > { %v5913_v12 = vmul.f32 %v6850_v11, %v5899_v53  ;;  %v5914_v51 = vmul.f32 %v6851_v26, %v5906_v18  ;;  %6761 = vmatmul.mubr.msk.f32.vlgmr.msra.gmra.mxu1 %vm344_vm1, %v6759_v58  ;;  %6762 = vmatmul.mubr.msk.f32.vlgmr.msra.gmra.mxu0 %vm344_vm1, %v6759_v58  ;;  %v6238_v48 = vmul.f32 %v6853_v14, %v6232_v7 }
 0x2b2   : > { %6279 = vmatprep.subr.mxu0 %v6237_v34  ;;  %6197 = vmatprep.mubr.f32.mxu1 %v6867_v4 }
 0x2b3   : > { %6280 = vmatpush1.msra.mxu0 %v6236_v13  ;;  %6163 = vmatprep.subr.mxu1 %v5914_v51  ;;  %v6223_v41 = vpop.permute.xlu1 %6222 }
 0x2b4   : > { %v6229_v9 = vsel %vm2987_vm8, %v6223_v41, %v6225_v29  ;;  %v6230_v49 = vsel %vm2987_vm8, %v8138_v17, %v6223_v41  ;;  %6164 = vmatpush1.msra.mxu1 %v5913_v12  ;;  %6313 = vmatprep.mubr.f32.mxu0 %v6867_v4 }
 0x2b5   : > { %v6240_v39 = vmul.f32 %v6854_v47, %v6230_v49  ;;  %v6241_v42 = vmul.f32 %v6855_v32, %v6229_v9  ;;  %6763 = vmatmul.mubr.msk.f32.vlgmr.msra.gmra.mxu1 %vm344_vm1, %v6759_v58  ;;  %6765 = vmatmul.mubr.msk.f32.vlgmr.msra.gmra.mxu0 %vm344_vm1, %v6764_v28 }
 0x2b6   : > { %6350 = vmatprep.subr.mxu1 %v6239_v25  ;;  %6384 = vmatprep.mubr.f32.mxu1 %v6867_v4 }
 0x2b7   : > { %6351 = vmatpush1.msra.mxu1 %v6238_v48  ;;  %6421 = vmatprep.subr.mxu0 %v6241_v42  ;;  %v6227_v17 = vpop.permute.xlu1 %6226 }
 0x2b8   : > { %v6228_v33 = vsel %vm2987_vm8, %v6225_v29, %v6227_v17  ;;  %v6235_v44 = vsel %vm2987_vm8, %v6227_v17, %v8253_v2  ;;  %6422 = vmatpush1.msra.mxu0 %v6240_v39  ;;  %6455 = vmatprep.mubr.f32.mxu0 %v6867_v4  ;;  %v289_v48 = vpop.permute.xlu0 %288 }
 0x2b9   : > { %v6242_v62 = vmul.f32 %v6856_v19, %v6228_v33  ;;  %v6243_v22 = vmul.f32 %v6857_v36, %v6235_v44  ;;  %6766 = vmatmul.mubr.msk.f32.vlgmr.msra.gmra.mxu1 %vm344_vm1, %v6764_v28  ;;  %6767 = vmatmul.mubr.msk.f32.vlgmr.msra.gmra.mxu0 %vm344_vm1, %v6764_v28  ;;  %v3605_v32 = vadd.f32 %v3387_v37, %v289_v48 }
 0x2ba   : > { %6526 = vmatprep.mubr.f32.mxu1 %v6867_v4  ;;  %v3606_v44 = vadd.f32 %v3389_v52, %v289_v48  ;;  %v3610_v37 = vadd.f32 %v8362_v63, %v289_v48  ;;  %v3612_v63 = vadd.f32 %v8360_v6, %v289_v48 }
 0x2bb   : > { %6492 = vmatprep.subr.mxu1 %v6243_v22 }
 0x2bc   : > { %6493 = vmatpush1.msra.mxu1 %v6242_v62  ;;  %v3607_v62 = vadd.f32 %v3458_v10, %v289_v48 }
 0x2bd   : > { %6768 = vmatmul.mubr.msk.f32.vlgmr.msra.gmra.mxu1 %vm344_vm1, %v6764_v28 }
 0x30d   : > { %v3786_v24 = vpop.f32.mrf.mxu1 }
 0x30f   : > { %v8364_v8 = vpop.f32.mrf.mxu1 }
 0x32c   : > { %v3715_v0 = vpop.f32.mrf.mxu0 }
 0x32d   : > { %v3933_v33 = vadd.f32 %v3715_v0, %v3605_v32  ;;  %v3611_v0 = vadd.f32 %v8358_v54, %v289_v48 }
 0x32e   : > { %v3717_v4 = vpop.f32.mrf.mxu0 }
 0x32f   : > { %v3934_v22 = vadd.f32 %v3717_v4, %v3606_v44 }
 0x330   : > { %v8366_v16 = vpop.f32.mrf.mxu1 }
 0x331   : > { %v3857_v46 = vpop.f32.mrf.mxu0 }
 0x332   : > { %v8368_v56 = vpop.f32.mrf.mxu1 }
 0x333   : > { %v8370_v21 = vpop.f32.mrf.mxu0 }
 0x335   : > { %v4115_v45 = vpop.f32.mrf.mxu1  ;;  %v4044_v23 = vpop.f32.mrf.mxu0 }
 0x337   : > { %v8372_v2 = vpop.f32.mrf.mxu1  ;;  %v4046_v61 = vpop.f32.mrf.mxu0 }
 0x339   : > { %v8374_v58 = vpop.f32.mrf.mxu1  ;;  %v4186_v5 = vpop.f32.mrf.mxu0 }
 0x33b   : > { %v8376_v40 = vpop.f32.mrf.mxu1  ;;  %v8378_v3 = vpop.f32.mrf.mxu0 }
 0x33d   : > { %v8380_v27 = vpop.f32.mrf.mxu1  ;;  %v4373_v30 = vpop.f32.mrf.mxu0 }
 0x33f   : > { %v8382_v43 = vpop.f32.mrf.mxu1  ;;  %v4375_v31 = vpop.f32.mrf.mxu0 }
 0x341   : > { %v8384_v57 = vpop.f32.mrf.mxu1  ;;  %v4515_v60 = vpop.f32.mrf.mxu0 }
 0x343   : > { %v8386_v15 = vpop.f32.mrf.mxu1  ;;  %v8388_v38 = vpop.f32.mrf.mxu0 }
 0x345   : > { %v8390_v34 = vpop.f32.mrf.mxu1  ;;  %v4702_v59 = vpop.f32.mrf.mxu0 }
 0x347   : > { %v8392_v35 = vpop.f32.mrf.mxu1  ;;  %v4704_v53 = vpop.f32.mrf.mxu0 }
 0x349   : > { %v8394_v18 = vpop.f32.mrf.mxu1  ;;  %v8396_v55 = vpop.f32.mrf.mxu0 }
 0x34b   : > { %v8398_v13 = vpop.f32.mrf.mxu1  ;;  %v8400_v11 = vpop.f32.mrf.mxu0 }
 0x34c   : > { %8490 = vst [vmem:[#allocation2_spill] sm:$0xff] %v8398_v13 }
 0x34d   : > { %v8402_v26 = vpop.f32.mrf.mxu1 }
 0x34e   : > { %v4999_v12 = vpop.f32.mrf.mxu0 }
 0x34f   : > { %v8404_v7 = vpop.f32.mrf.mxu1 }
 0x350   : > { %v5001_v51 = vpop.f32.mrf.mxu0  ;;  %8491 = vst [vmem:[#allocation3_spill] sm:$0xff] %v8404_v7 }
 0x351   : > { %v8408_v41 = vpop.f32.mrf.mxu1 }
 0x352   : > { %v8406_v29 = vpop.f32.mrf.mxu0  ;;  %8492 = vst [vmem:[#allocation4_spill] sm:$0xff] %v8408_v41  ;;  %v4262_v41 = vadd.f32 %v4044_v23, %v3933_v33 }
 0x353   : > { %v8412_v20 = vpop.f32.mrf.mxu1 }
 0x354   : > { %v8410_v28 = vpop.f32.mrf.mxu0  ;;  %8494 = vst [vmem:[#allocation6_spill] sm:$0xff] %v8412_v20  ;;  %v3609_v20 = vadd.f32 %v3529_v1, %v289_v48  ;;  %v3938_v1 = vadd.f32 %v8370_v21, %v3610_v37 }
 0x355   : > { %8493 = vst [vmem:[#allocation5_spill] sm:$0xff] %v8410_v28  ;;  %v8414_v9 = vpop.f32.mrf.mxu1  ;;  %v3608_v28 = vadd.f32 %v8356_v50, %v289_v48  ;;  %v3939_v50 = vadd.f32 %v8366_v16, %v3611_v0 }
 0x356   : > { %v5328_v25 = vpop.f32.mrf.mxu0  ;;  %8495 = vst [vmem:[#allocation7_spill] sm:$0xff] %v8414_v9  ;;  %v3937_v9 = vadd.f32 %v3857_v46, %v3609_v20  ;;  %v4267_v54 = vadd.f32 %v8378_v3, %v3938_v1 }
 0x357   : > { %v8418_v47 = vpop.f32.mrf.mxu1  ;;  %v3936_v52 = vadd.f32 %v8364_v8, %v3608_v28 }
 0x358   : > { %v5330_v49 = vpop.f32.mrf.mxu0  ;;  %8497 = vst [vmem:[#allocation9_spill] sm:$0xff] %v8418_v47  ;;  %v4266_v4 = vadd.f32 %v4186_v5, %v3937_v9  ;;  %v3940_v5 = vadd.f32 %v8368_v56, %v3612_v63 }
 0x359   : > { %v4265_v46 = vadd.f32 %v8372_v2, %v3936_v52  ;;  %v4596_v2 = vadd.f32 %v8388_v38, %v4267_v54 }
 0x35b   : > { %v8508_v63 = vld [vmem:[#allocation6_spill] sm:$0xff] }
 0x35d   : > { %v8501_v48 = vld [vmem:[#allocation7_spill] sm:$0xff] }
 0x361   : > { %v8416_v14 = vpop.f32.mrf.mxu0 }
 0x362   : > { %8496 = vst [vmem:[#allocation8_spill] sm:$0xff] %v8416_v14  ;;  %v3935_v14 = vadd.f32 %v3786_v24, %v3607_v62 }
 0x363   : > { %v8420_v39 = vpop.f32.mrf.mxu0 }
 0x364   : > { %8498 = vst [vmem:[#allocation10_spill] sm:$0xff] %v8420_v39  ;;  %v4263_v39 = vadd.f32 %v4046_v61, %v3934_v22  ;;  %v4264_v10 = vadd.f32 %v4115_v45, %v3935_v14  ;;  %v4595_v45 = vadd.f32 %v4515_v60, %v4266_v4  ;;  %v4269_v60 = vadd.f32 %v8376_v40, %v3940_v5  ;;  %v8505_v22 = vld [vmem:[#allocation4_spill] sm:$0xff] }
 0x365   : > { %v8422_v42 = vpop.f32.mrf.mxu1  ;;  %v5657_v17 = vpop.f32.mrf.mxu0 }
 0x366   : > { %8499 = vst [vmem:[#allocation11_spill] sm:$0xff] %v8422_v42  ;;  %v4591_v42 = vadd.f32 %v4373_v30, %v4262_v41  ;;  %v4592_v23 = vadd.f32 %v4375_v31, %v4263_v39  ;;  %v4593_v61 = vadd.f32 %v8380_v27, %v4264_v10  ;;  %v4268_v31 = vadd.f32 %v8374_v58, %v3939_v50 }
 0x367   : > { %v8424_v19 = vpop.f32.mrf.mxu1  ;;  %v5659_v36 = vpop.f32.mrf.mxu0  ;;  %v4924_v27 = vadd.f32 %v8396_v55, %v4595_v45  ;;  %v4598_v55 = vadd.f32 %v8386_v15, %v4269_v60  ;;  %v8506_v15 = vld [vmem:[#allocation9_spill] sm:$0xff] }
 0x368   : > { %v4920_v24 = vadd.f32 %v4702_v59, %v4591_v42  ;;  %v4921_v30 = vadd.f32 %v4704_v53, %v4592_v23  ;;  %v4594_v59 = vadd.f32 %v8382_v43, %v4265_v46  ;;  %v4922_v16 = vadd.f32 %v8390_v34, %v4593_v61 }
 0x369   : > { %v5728_v13 = vpop.f32.mrf.mxu1  ;;  %v5799_v47 = vpop.f32.mrf.mxu0  ;;  %v4597_v53 = vadd.f32 %v8384_v57, %v4268_v31  ;;  %v4925_v43 = vadd.f32 %v8400_v11, %v4596_v2  ;;  %v5221_v34 = vadd.f32 %v8406_v29, %v4924_v27 }
 0x36a   : > { %v5217_v41 = vadd.f32 %v4999_v12, %v4920_v24  ;;  %v5218_v28 = vadd.f32 %v5001_v51, %v4921_v30  ;;  %v4923_v56 = vadd.f32 %v8392_v35, %v4594_v59  ;;  %v5219_v58 = vadd.f32 %v8402_v26, %v4922_v16  ;;  %v8502_v35 = vld [vmem:[#allocation5_spill] sm:$0xff]  ;;  %v8503_v26 = vld [vmem:[#allocation8_spill] sm:$0xff] }
 0x36b   : > { %v5730_v7 = vpop.f32.mrf.mxu1  ;;  %v5801_v32 = vpop.f32.mrf.mxu0  ;;  %v4926_v51 = vadd.f32 %v8394_v18, %v4597_v53  ;;  %v5222_v42 = vadd.f32 %v8502_v35, %v4925_v43  ;;  %v5550_v44 = vadd.f32 %v8503_v26, %v5221_v34  ;;  %v8507_v10 = vld [vmem:[#allocation10_spill] sm:$0xff] }
 0x36c   : > { %v5546_v20 = vadd.f32 %v5328_v25, %v5217_v41  ;;  %v5547_v9 = vadd.f32 %v5330_v49, %v5218_v28  ;;  %v8500_v25 = vld [vmem:[#allocation3_spill] sm:$0xff]  ;;  %v5548_v57 = vadd.f32 %v8501_v48, %v5219_v58  ;;  %v8504_v49 = vld [vmem:[#allocation2_spill] sm:$0xff] }
 0x36d   : > { %v8431_v33 = vpop.f32.mrf.mxu1  ;;  %v5986_v8 = vpop.f32.mrf.mxu0  ;;  %v5220_v40 = vadd.f32 %v8500_v25, %v4923_v56  ;;  %v5223_v37 = vadd.f32 %v8505_v22, %v4926_v51  ;;  %v5551_v1 = vadd.f32 %v8507_v10, %v5222_v42  ;;  %v5879_v4 = vadd.f32 %v5799_v47, %v5550_v44 }
 0x36e   : > { %v5875_v38 = vadd.f32 %v5657_v17, %v5546_v20  ;;  %v5876_v62 = vadd.f32 %v5659_v36, %v5547_v9  ;;  %v4927_v17 = vadd.f32 %v8504_v49, %v4598_v55  ;;  %v5877_v18 = vadd.f32 %v5728_v13, %v5548_v57  ;;  %v8509_v36 = vld [vmem:[#allocation11_spill] sm:$0xff] }
 0x36f   : > { %v5872_v21 = vpop.f32.mrf.mxu1  ;;  %v5988_v6 = vpop.f32.mrf.mxu0  ;;  %v5549_v52 = vadd.f32 %v8506_v15, %v5220_v40  ;;  %v5552_v61 = vadd.f32 %v8509_v36, %v5223_v37  ;;  %v5880_v45 = vadd.f32 %v5801_v32, %v5551_v1 }
 0x370   : > { %v6204_v11 = vadd.f32 %v5986_v8, %v5875_v38  ;;  %v6205_v23 = vadd.f32 %v5988_v6, %v5876_v62  ;;  %v5224_v46 = vadd.f32 %v8508_v63, %v4927_v17 }
 0x371   : > { %v6057_v3 = vpop.f32.mrf.mxu1  ;;  %v6128_v12 = vpop.f32.mrf.mxu0  ;;  %v5878_v8 = vadd.f32 %v5730_v7, %v5549_v52  ;;  %v5881_v59 = vadd.f32 %v8431_v33, %v5552_v61 }
 0x372   : > { %v6206_v54 = vadd.f32 %v6057_v3, %v5877_v18  ;;  %v6208_v30 = vadd.f32 %v6128_v12, %v5879_v4  ;;  %v5553_v31 = vadd.f32 %v8424_v19, %v5224_v46 }
 0x373   : > { %v6059_v14 = vpop.f32.mrf.mxu1  ;;  %v6130_v39 = vpop.f32.mrf.mxu0 }
 0x374   : > { %v6207_v7 = vadd.f32 %v6059_v14, %v5878_v8  ;;  %v6209_v2 = vadd.f32 %v6130_v39, %v5880_v45  ;;  %v5882_v32 = vadd.f32 %v5872_v21, %v5553_v31 }
 0x375   : > { %v6199_v29 = vpop.f32.mrf.mxu1  ;;  %v6315_v0 = vpop.f32.mrf.mxu0 }
 0x376   : > { %v6533_v24 = vadd.f32 %v6315_v0, %v6204_v11  ;;  %v6210_v3 = vadd.f32 %v6199_v29, %v5881_v59 }
 0x377   : > { %v6201_v50 = vpop.f32.mrf.mxu1  ;;  %v6317_v13 = vpop.f32.mrf.mxu0 }
 0x378   : > { %v6541_v47 = vmax.f32 %v6533_v24, 0.0  ;;  %v6534_v41 = vadd.f32 %v6317_v13, %v6205_v23  ;;  %v6211_v12 = vadd.f32 %v6201_v50, %v5882_v32 }
 0x379   : > { %v6386_v5 = vpop.f32.mrf.mxu1  ;;  %v6457_v6 = vpop.f32.mrf.mxu0 }
 0x37a   : > { %v6535_v16 = vadd.f32 %v6386_v5, %v6206_v54  ;;  %6549 = vst [vmem:[%s8467_s23] sm:$0xff] %v6541_v47  ;;  %v6542_v27 = vmax.f32 %v6534_v41, 0.0  ;;  %v6537_v28 = vadd.f32 %v6457_v6, %v6208_v30 }
 0x37b   : > { %v6388_v20 = vpop.f32.mrf.mxu1  ;;  %v6459_v56 = vpop.f32.mrf.mxu0 }
 0x37c   : > { %v6543_v60 = vmax.f32 %v6535_v16, 0.0  ;;  %v6536_v53 = vadd.f32 %v6388_v20, %v6207_v7  ;;  %6550 = vst [vmem:[%s8467_s23 + $0x8] sm:$0xff] %v6542_v27  ;;  %v6545_v19 = vmax.f32 %v6537_v28, 0.0  ;;  %v6538_v33 = vadd.f32 %v6459_v56, %v6209_v2 }
 0x37d   : > { %v6528_v58 = vpop.f32.mrf.mxu1 }
 0x37e   : > { %6551 = vst [vmem:[%s8467_s23 + $0x10] sm:$0xff] %v6543_v60  ;;  %v6544_v43 = vmax.f32 %v6536_v53, 0.0  ;;  %v6539_v34 = vadd.f32 %v6528_v58, %v6210_v3  ;;  %6553 = vst [vmem:[%s8467_s23 + $0x20] sm:$0xff] %v6545_v19  ;;  %v6546_v9 = vmax.f32 %v6538_v33, 0.0 }
 0x37f   : > { %v6530_v38 = vpop.f32.mrf.mxu1 }
 0x380   : > { %6552 = vst [vmem:[%s8467_s23 + $0x18] sm:$0xff] %v6544_v43  ;;  %v6547_v21 = vmax.f32 %v6539_v34, 0.0  ;;  %v6540_v14 = vadd.f32 %v6530_v38, %v6211_v12  ;;  %6554 = vst [vmem:[%s8467_s23 + $0x28] sm:$0xff] %v6546_v9 }
 0x382   : > { %6555 = vst [vmem:[%s8467_s23 + $0x30] sm:$0xff] %v6547_v21  ;;  %v6548_v55 = vmax.f32 %v6540_v14, 0.0 }
 0x384   : > { %6556 = vst [vmem:[%s8467_s23 + $0x38] sm:$0xff] %v6548_v55 }
 0x385 PF: > { %s17_s24 = sadd.s32 1, %s6864_s24  }
 0x386   : > { %p14_p4 = scmp.ge.s32.totalorder %s17_s24, 4  }
 0x388   :  { %16 = sbr.rel (!%p14_p4) target bundleno = 1 (0x1), region = 101 }

</bundles_post_ra>
